<compile_context>
chip_gen: v5e
topology: v5e:2x2
jax: 0.10.0
libtpu: 0.0.40
codegen_flags: <defaults>
</compile_context>

<pallas_src>
import math

import jax
import jax.numpy as jnp
from jax.experimental import pallas as pl
from jax.experimental.pallas import tpu as pltpu

# ----------------------------- configuration --------------------------------
VOCAB = 50
VOCAB_PAD = 64                     # vocab rows padded to a sublane multiple
EMBED = 32
HEADS = 4
HEAD_DIM = EMBED // HEADS
NUM_LAYERS = 2
FWD_EXP = 4
FF_DIM = FWD_EXP * EMBED           # 128
MAX_LEN = 16
SEQ = 8
BATCH = 2
NS = BATCH * SEQ                   # batch folded onto the sublane axis
LN_EPS = 1e-5
NEG_INF = -1e20


# ----------------------------- Pallas kernel ---------------------------------
def encoder_kernel(tok_ref, mask_ref, const_ref, w_ref, w2t_ref, vec_ref, out_ref):
    """Whole encoder stack (embedding + all layers) in one fused kernel.

    tok_ref   : (NS, 1)  int32   token ids (batch folded into sublanes)
    mask_ref  : (N, S, S) f32    key-padding mask (nonzero = keep)
    const_ref : (VOCAB_PAD+NS, E) [padded word embedding ; positional slab]
    w_ref     : (L, E, 3E+E+FF)  [pre-scaled block-diag QKV | Wo^T | W1^T]
    w2t_ref   : (L, FF, E)       W2^T
    vec_ref   : (L, 8, E+FF)     rows 0..5 lanes[:E] = bo,g1,be1,b2,g2,be2;
                                 row 0 lanes[E:] = b1
    out_ref   : (NS, E)
    """
    E, D, H, FF, S = EMBED, HEAD_DIM, HEADS, FF_DIM, SEQ

    # ---- fused embedding gather (exact one-hot matmul on the MXU) ----
    tok = tok_ref[...]                                            # (NS, 1) int32
    lane = jax.lax.broadcasted_iota(jnp.int32, (NS, VOCAB_PAD), 1)
    onehot = (lane == tok).astype(jnp.float32)                    # (NS, VOCAB_PAD)
    word = const_ref[0:VOCAB_PAD, :]                              # (VOCAB_PAD, E)
    pos = const_ref[VOCAB_PAD:VOCAB_PAD + NS, :]                  # (NS, E)
    x = jnp.dot(onehot, word, preferred_element_type=jnp.float32) + pos

    # ---- additive attention bias: block-diagonal over the folded batch ----
    msk = mask_ref[...]                                           # (N, S, S)
    neg_blk = jnp.full((S, S), NEG_INF, dtype=jnp.float32)
    rows = []
    for nq in range(BATCH):
        blocks = []
        for nk in range(BATCH):
            if nk == nq:
                blocks.append(
                    jnp.where(msk[nq] != 0.0, 0.0, NEG_INF).astype(jnp.float32))
            else:
                blocks.append(neg_blk)
        rows.append(jnp.concatenate(blocks, axis=1))
    bias = jnp.concatenate(rows, axis=0)                          # (NS, NS)
    bias_stack = jnp.concatenate([bias] * H, axis=0)              # (H*NS, NS)

    def layer_norm(z, gamma, beta):
        mu = jnp.mean(z, axis=-1, keepdims=True)
        var = jnp.mean((z - mu) ** 2, axis=-1, keepdims=True)
        return (z - mu) * jax.lax.rsqrt(var + LN_EPS) * gamma + beta

    for l in range(NUM_LAYERS):                                   # static unroll
        w_l = w_ref[l]                                            # (E, 3E+E+FF)
        wqkv = w_l[:, 0:3 * E]                                    # (E, 96)
        wot = w_l[:, 3 * E:4 * E]                                 # (E, 32)
        w1t = w_l[:, 4 * E:4 * E + FF]                            # (E, 128)
        w2t = w2t_ref[l]                                          # (FF, E)
        vec = vec_ref[l]                                          # (8, E+FF)
        bo, g1, be1 = vec[0:1, 0:E], vec[1:2, 0:E], vec[2:3, 0:E]
        b2, g2, be2 = vec[3:4, 0:E], vec[4:5, 0:E], vec[5:6, 0:E]
        b1 = vec[0:1, E:E + FF]                                   # (1, FF)

        # Fused, pre-scaled Q/K/V projection: one (NS,32)@(32,96) matmul.
        qkv = jnp.dot(x, wqkv, preferred_element_type=jnp.float32)   # (NS, 3E)

        # All-head energies stacked on the sublane axis -> ONE softmax pass.
        e_heads = []
        for h in range(H):
            qh = qkv[:, h * D:(h + 1) * D]                        # (NS, D)
            kh = qkv[:, E + h * D:E + (h + 1) * D]                # (NS, D)
            e_heads.append(jnp.einsum('qd,kd->qk', qh, kh,
                                      preferred_element_type=jnp.float32))
        e_stack = jnp.concatenate(e_heads, axis=0) + bias_stack   # (H*NS, NS)

        m_row = jnp.max(e_stack, axis=-1, keepdims=True)
        p = jnp.exp(e_stack - m_row)
        denom = jnp.sum(p, axis=-1, keepdims=True)                # (H*NS, 1)
        # Exact reciprocal preserves the 1e-4 check; approx=True would move the
        # divide fully onto the EUP if looser tolerance is acceptable.
        inv = pl.reciprocal(denom, approx=False)

        # Per-head context; normalization deferred past the matmul; heads
        # concatenated on the lane axis for a single K=32 output projection.
        ctx_heads = []
        for h in range(H):
            ph = p[h * NS:(h + 1) * NS, :]                        # (NS, NS)
            vh = qkv[:, 2 * E + h * D:2 * E + (h + 1) * D]        # (NS, D)
            ctx_h = jnp.dot(ph, vh, preferred_element_type=jnp.float32)
            ctx_heads.append(ctx_h * inv[h * NS:(h + 1) * NS, :])
        ctx = jnp.concatenate(ctx_heads, axis=1)                  # (NS, E)

        attn_out = jnp.dot(ctx, wot, preferred_element_type=jnp.float32) + bo

        # norm1(attention + query)          (dropout == identity, eval mode)
        x1 = layer_norm(attn_out + x, g1, be1)

        # feed-forward: Linear -> ReLU -> Linear
        hid = jnp.dot(x1, w1t, preferred_element_type=jnp.float32) + b1
        hid = jnp.maximum(hid, 0.0)
        ff = jnp.dot(hid, w2t, preferred_element_type=jnp.float32) + b2

        # norm2(forward + x)                (dropout == identity)
        x = layer_norm(ff + x1, g2, be2)

    out_ref[...] = x


# ----------------------------- parameter packing (one-time) ------------------
def pack_params(params, n_batch, seq_len):
    """One-time preprocessing of raw (PyTorch-layout) params into packed slabs."""
    E, H, FF = EMBED, HEADS, FF_DIM
    eye_h = jnp.eye(H, dtype=jnp.float32)
    inv_sqrt_e = 1.0 / math.sqrt(E)

    w_slab, w2t_slab, vec_slab = [], [], []
    for p in params['layers']:
        wq_bd = jnp.kron(eye_h, p['wq'].T) * inv_sqrt_e   # fold 1/sqrt(E) into Q
        wk_bd = jnp.kron(eye_h, p['wk'].T)
        wv_bd = jnp.kron(eye_h, p['wv'].T)
        wqkv = jnp.concatenate([wq_bd, wk_bd, wv_bd], axis=1)          # (E, 3E)
        w_slab.append(jnp.concatenate([wqkv, p['wo'].T, p['w1'].T], axis=1))
        w2t_slab.append(p['w2'].T)                                     # (FF, E)

        v = jnp.zeros((8, E + FF), jnp.float32)
        v = v.at[0:6, 0:E].set(jnp.concatenate(
            [p['bo'], p['g1'], p['be1'], p['b2'], p['g2'], p['be2']], axis=0))
        v = v.at[0:1, E:E + FF].set(p['b1'])
        vec_slab.append(v)

    word_pad = jnp.zeros((VOCAB_PAD, E), jnp.float32).at[:VOCAB, :].set(
        params['word_emb'].astype(jnp.float32))
    positions = jnp.broadcast_to(jnp.arange(seq_len), (n_batch, seq_len))
    pos_slab = params['pos_emb'][positions].reshape(n_batch * seq_len, E)
    const_slab = jnp.concatenate([word_pad, pos_slab.astype(jnp.float32)], axis=0)

    return dict(const=const_slab,
                w=jnp.stack(w_slab).astype(jnp.float32),
                w2t=jnp.stack(w2t_slab).astype(jnp.float32),
                vec=jnp.stack(vec_slab).astype(jnp.float32))


# ----------------------------- forward wrapper --------------------------------
def encoder_forward(tokens, mask, const_slab, w_slab, w2t_slab, vec_slab):
    """Per-call path: two tiny reshapes + one fused Pallas call (no grid)."""
    N, S = tokens.shape
    ns = N * S
    tok2d = tokens.reshape(ns, 1).astype(jnp.int32)
    mask3 = mask.reshape(N, S, S).astype(jnp.float32)

    vmem = lambda: pl.BlockSpec(memory_space=pltpu.MemorySpace.VMEM)
    out = pl.pallas_call(
        encoder_kernel,
        out_shape=jax.ShapeDtypeStruct((ns, EMBED), jnp.float32),
        in_specs=[vmem() for _ in range(6)],
        out_specs=vmem(),
    )(tok2d, mask3, const_slab, w_slab, w2t_slab, vec_slab)
    return out.reshape(N, S, EMBED)


# ----------------------------- pure-JAX reference ----------------------------
def _ref_block(x, mask, p):
    N, S, E = x.shape
    H, D = HEADS, HEAD_DIM
    xh = x.reshape(N, S, H, D)
    q = jnp.einsum('nshd,od->nsho', xh, p['wq'])
    k = jnp.einsum('nshd,od->nsho', xh, p['wk'])
    v = jnp.einsum('nshd,od->nsho', xh, p['wv'])
    energy = jnp.einsum('nqhd,nkhd->nhqk', q, k)
    energy = jnp.where(mask == 0.0, NEG_INF, energy)
    attn = jax.nn.softmax(energy / math.sqrt(E), axis=-1)
    ctx = jnp.einsum('nhql,nlhd->nqhd', attn, v).reshape(N, S, E)
    attn_out = jnp.einsum('nse,oe->nso', ctx, p['wo']) + p['bo'][0]

    def ln(z, g, b):
        mu = jnp.mean(z, axis=-1, keepdims=True)
        var = jnp.mean((z - mu) ** 2, axis=-1, keepdims=True)
        return (z - mu) * jax.lax.rsqrt(var + LN_EPS) * g[0] + b[0]

    x1 = ln(attn_out + x, p['g1'], p['be1'])
    h = jax.nn.relu(jnp.einsum('nse,fe->nsf', x1, p['w1']) + p['b1'][0])
    ff = jnp.einsum('nsf,ef->nse', h, p['w2']) + p['b2'][0]
    return ln(ff + x1, p['g2'], p['be2'])


def ref_encoder(tokens, mask, params):
    N, S = tokens.shape
    positions = jnp.broadcast_to(jnp.arange(S)[None, :], (N, S))
    out = params['word_emb'][tokens] + params['pos_emb'][positions]
    for lp in params['layers']:
        out = _ref_block(out, mask, lp)
    return out


# ----------------------------- params ----------------------------------------
def init_params(key):
    n_rand = 2 + 9 * NUM_LAYERS
    keys = list(jax.random.split(key, n_rand))
    it = iter(keys)

    def nrm(shape, scale=0.05):
        return (scale * jax.random.normal(next(it), shape)).astype(jnp.float32)

    params = {
        'word_emb': nrm((VOCAB, EMBED), 1.0),
        'pos_emb': nrm((MAX_LEN, EMBED), 1.0),
        'layers': [],
    }
    for _ in range(NUM_LAYERS):
        params['layers'].append(dict(
            wq=nrm((HEAD_DIM, HEAD_DIM)),
            wk=nrm((HEAD_DIM, HEAD_DIM)),
            wv=nrm((HEAD_DIM, HEAD_DIM)),
            wo=nrm((EMBED, EMBED)),
            bo=nrm((1, EMBED)),
            g1=jnp.ones((1, EMBED), jnp.float32),
            be1=jnp.zeros((1, EMBED), jnp.float32),
            w1=nrm((FF_DIM, EMBED)),
            b1=nrm((1, FF_DIM)),
            w2=nrm((EMBED, FF_DIM)),
            b2=nrm((1, EMBED)),
            g2=jnp.ones((1, EMBED), jnp.float32),
            be2=jnp.zeros((1, EMBED), jnp.float32),
        ))
    return params


# ----------------------------- main -------------------------------------------
if __name__ == "__main__":
    key = jax.random.PRNGKey(0)
    pkey, tkey = jax.random.split(key)
    params = init_params(pkey)

    tokens = jax.random.randint(tkey, (BATCH, SEQ), 0, VOCAB, dtype=jnp.int32)

    # Key-padding mask: batch 0 fully valid, batch 1 has last 2 keys masked.
    lengths = jnp.array([SEQ, SEQ - 2], dtype=jnp.int32)
    key_valid = (jnp.arange(SEQ)[None, :] < lengths[:, None]).astype(jnp.float32)
    mask = jnp.broadcast_to(key_valid[:, None, None, :], (BATCH, 1, SEQ, SEQ))
    mask = jnp.asarray(mask)

    # One-time parameter packing, hoisted OUT of the jitted per-call path.
    packed = pack_params(params, BATCH, SEQ)

    fwd = jax.jit(encoder_forward)
    out = fwd(tokens, mask, packed['const'], packed['w'],
              packed['w2t'], packed['vec'])
    out = jax.block_until_ready(out)

    ref = ref_encoder(tokens, mask, params)
    assert out.shape == (BATCH, SEQ, EMBED)
    max_err = float(jnp.max(jnp.abs(out - ref)))
    assert jnp.allclose(out, ref, atol=1e-4, rtol=1e-4), max_err

    print("KERNEL_OK")
</pallas_src>

<mosaic_0001>
module attributes {stable_mosaic.version = 11 : i64} {
  func.func @encoder_kernel(%arg0: memref<16x1xi32, #tpu.memory_space<vmem>>, %arg1: memref<2x8x8xf32, #tpu.memory_space<vmem>>, %arg2: memref<80x32xf32, #tpu.memory_space<vmem>>, %arg3: memref<2x32x256xf32, #tpu.memory_space<vmem>>, %arg4: memref<2x128x32xf32, #tpu.memory_space<vmem>>, %arg5: memref<2x8x160xf32, #tpu.memory_space<vmem>>, %arg6: memref<16x32xf32, #tpu.memory_space<vmem>>) attributes {dimension_semantics = [], scalar_prefetch = 0 : i64, scratch_operands = 0 : i64, tpu.core_type = #tpu.core_type<tc>} {
    %c0 = arith.constant 0 : index
    %c0_0 = arith.constant 0 : index
    %0 = vector.load %arg0[%c0, %c0_0] : memref<16x1xi32, #tpu.memory_space<vmem>>, vector<16x1xi32>
    %1 = tpu.iota {dimensions = array<i32: 1>} : vector<16x64xi32>
    %2 = vector.broadcast %0 : vector<16x1xi32> to vector<16x64xi32>
    %3 = arith.cmpi eq, %1, %2 : vector<16x64xi32>
    %4 = arith.extui %3 : vector<16x64xi1> to vector<16x64xi32>
    %5 = arith.sitofp %4 : vector<16x64xi32> to vector<16x64xf32>
    %c0_1 = arith.constant 0 : index
    %c0_2 = arith.constant 0 : index
    %6 = vector.load %arg2[%c0_1, %c0_2] : memref<80x32xf32, #tpu.memory_space<vmem>>, vector<64x32xf32>
    %c64 = arith.constant 64 : index
    %c0_3 = arith.constant 0 : index
    %7 = vector.load %arg2[%c64, %c0_3] : memref<80x32xf32, #tpu.memory_space<vmem>>, vector<16x32xf32>
    %cst = arith.constant dense<0.000000e+00> : vector<16x32xf32>
    %8 = tpu.matmul %5, %6, %cst {dimension_numbers = #tpu.dot_dimension_numbers<[1], [0], [0], [1], [0, 0, 1, 1], [], []>} : vector<16x64xf32>, vector<64x32xf32>, vector<16x32xf32> -> vector<16x32xf32>
    %9 = arith.addf %8, %7 : vector<16x32xf32>
    %c0_4 = arith.constant 0 : index
    %c0_5 = arith.constant 0 : index
    %c0_6 = arith.constant 0 : index
    %10 = vector.load %arg1[%c0_4, %c0_5, %c0_6] : memref<2x8x8xf32, #tpu.memory_space<vmem>>, vector<2x8x8xf32>
    %cst_7 = arith.constant -1.000000e+20 : f32
    %11 = vector.broadcast %cst_7 : f32 to vector<8x8xf32>
    %12 = vector.extract_strided_slice %10 {offsets = [0, 0, 0], sizes = [1, 8, 8], strides = [1, 1, 1]} : vector<2x8x8xf32> to vector<1x8x8xf32>
    %13 = vector.shape_cast %12 : vector<1x8x8xf32> to vector<8x8xf32>
    %cst_8 = arith.constant 0.000000e+00 : f32
    %14 = vector.broadcast %cst_8 : f32 to vector<8x8xf32>
    %15 = arith.cmpf one, %13, %14 : vector<8x8xf32>
    %cst_9 = arith.constant 0.000000e+00 : f32
    %cst_10 = arith.constant -1.000000e+20 : f32
    %16 = vector.broadcast %cst_9 : f32 to vector<8x8xf32>
    %17 = vector.broadcast %cst_10 : f32 to vector<8x8xf32>
    %18 = arith.select %15, %16, %17 : vector<8x8xi1>, vector<8x8xf32>
    %19 = tpu.concatenate %18, %11 in 1 : vector<8x8xf32>, vector<8x8xf32> -> vector<8x16xf32>
    %20 = vector.extract_strided_slice %10 {offsets = [1, 0, 0], sizes = [1, 8, 8], strides = [1, 1, 1]} : vector<2x8x8xf32> to vector<1x8x8xf32>
    %21 = vector.shape_cast %20 : vector<1x8x8xf32> to vector<8x8xf32>
    %cst_11 = arith.constant 0.000000e+00 : f32
    %22 = vector.broadcast %cst_11 : f32 to vector<8x8xf32>
    %23 = arith.cmpf one, %21, %22 : vector<8x8xf32>
    %cst_12 = arith.constant 0.000000e+00 : f32
    %cst_13 = arith.constant -1.000000e+20 : f32
    %24 = vector.broadcast %cst_12 : f32 to vector<8x8xf32>
    %25 = vector.broadcast %cst_13 : f32 to vector<8x8xf32>
    %26 = arith.select %23, %24, %25 : vector<8x8xi1>, vector<8x8xf32>
    %27 = tpu.concatenate %11, %26 in 1 : vector<8x8xf32>, vector<8x8xf32> -> vector<8x16xf32>
    %28 = tpu.concatenate %19, %27 in 0 : vector<8x16xf32>, vector<8x16xf32> -> vector<16x16xf32>
    %29 = tpu.concatenate %28, %28, %28, %28 in 0 : vector<16x16xf32>, vector<16x16xf32>, vector<16x16xf32>, vector<16x16xf32> -> vector<64x16xf32>
    %c0_14 = arith.constant 0 : index
    %c0_15 = arith.constant 0 : index
    %c0_16 = arith.constant 0 : index
    %30 = vector.load %arg3[%c0_14, %c0_15, %c0_16] : memref<2x32x256xf32, #tpu.memory_space<vmem>>, vector<1x32x256xf32>
    %31 = vector.shape_cast %30 : vector<1x32x256xf32> to vector<32x256xf32>
    %32 = vector.extract_strided_slice %31 {offsets = [0, 0], sizes = [32, 96], strides = [1, 1]} : vector<32x256xf32> to vector<32x96xf32>
    %33 = vector.extract_strided_slice %31 {offsets = [0, 96], sizes = [32, 32], strides = [1, 1]} : vector<32x256xf32> to vector<32x32xf32>
    %34 = vector.extract_strided_slice %31 {offsets = [0, 128], sizes = [32, 128], strides = [1, 1]} : vector<32x256xf32> to vector<32x128xf32>
    %c0_17 = arith.constant 0 : index
    %c0_18 = arith.constant 0 : index
    %c0_19 = arith.constant 0 : index
    %35 = vector.load %arg4[%c0_17, %c0_18, %c0_19] : memref<2x128x32xf32, #tpu.memory_space<vmem>>, vector<1x128x32xf32>
    %36 = vector.shape_cast %35 : vector<1x128x32xf32> to vector<128x32xf32>
    %c0_20 = arith.constant 0 : index
    %c0_21 = arith.constant 0 : index
    %c0_22 = arith.constant 0 : index
    %37 = vector.load %arg5[%c0_20, %c0_21, %c0_22] : memref<2x8x160xf32, #tpu.memory_space<vmem>>, vector<1x8x160xf32>
    %38 = vector.shape_cast %37 : vector<1x8x160xf32> to vector<8x160xf32>
    %39 = vector.extract_strided_slice %38 {offsets = [0, 0], sizes = [1, 32], strides = [1, 1]} : vector<8x160xf32> to vector<1x32xf32>
    %40 = vector.extract_strided_slice %38 {offsets = [1, 0], sizes = [1, 32], strides = [1, 1]} : vector<8x160xf32> to vector<1x32xf32>
    %41 = vector.extract_strided_slice %38 {offsets = [2, 0], sizes = [1, 32], strides = [1, 1]} : vector<8x160xf32> to vector<1x32xf32>
    %42 = vector.extract_strided_slice %38 {offsets = [3, 0], sizes = [1, 32], strides = [1, 1]} : vector<8x160xf32> to vector<1x32xf32>
    %43 = vector.extract_strided_slice %38 {offsets = [4, 0], sizes = [1, 32], strides = [1, 1]} : vector<8x160xf32> to vector<1x32xf32>
    %44 = vector.extract_strided_slice %38 {offsets = [5, 0], sizes = [1, 32], strides = [1, 1]} : vector<8x160xf32> to vector<1x32xf32>
    %45 = vector.extract_strided_slice %38 {offsets = [0, 32], sizes = [1, 128], strides = [1, 1]} : vector<8x160xf32> to vector<1x128xf32>
    %cst_23 = arith.constant dense<0.000000e+00> : vector<16x96xf32>
    %46 = tpu.matmul %9, %32, %cst_23 {dimension_numbers = #tpu.dot_dimension_numbers<[1], [0], [0], [1], [0, 0, 1, 1], [], []>} : vector<16x32xf32>, vector<32x96xf32>, vector<16x96xf32> -> vector<16x96xf32>
    %47 = vector.extract_strided_slice %46 {offsets = [0, 0], sizes = [16, 8], strides = [1, 1]} : vector<16x96xf32> to vector<16x8xf32>
    %48 = vector.extract_strided_slice %46 {offsets = [0, 32], sizes = [16, 8], strides = [1, 1]} : vector<16x96xf32> to vector<16x8xf32>
    "tpu.trace_start"() <{level = 10 : i32, message = "qd,kd->qk"}> : () -> ()
    %cst_24 = arith.constant dense<0.000000e+00> : vector<16x16xf32>
    %49 = tpu.matmul %47, %48, %cst_24 {dimension_numbers = #tpu.dot_dimension_numbers<[1], [1], [0], [0], [0, 0, 1, 0], [], []>} : vector<16x8xf32>, vector<16x8xf32>, vector<16x16xf32> -> vector<16x16xf32>
    "tpu.trace_stop"() : () -> ()
    %50 = vector.extract_strided_slice %46 {offsets = [0, 8], sizes = [16, 8], strides = [1, 1]} : vector<16x96xf32> to vector<16x8xf32>
    %51 = vector.extract_strided_slice %46 {offsets = [0, 40], sizes = [16, 8], strides = [1, 1]} : vector<16x96xf32> to vector<16x8xf32>
    "tpu.trace_start"() <{level = 10 : i32, message = "qd,kd->qk"}> : () -> ()
    %cst_25 = arith.constant dense<0.000000e+00> : vector<16x16xf32>
    %52 = tpu.matmul %50, %51, %cst_25 {dimension_numbers = #tpu.dot_dimension_numbers<[1], [1], [0], [0], [0, 0, 1, 0], [], []>} : vector<16x8xf32>, vector<16x8xf32>, vector<16x16xf32> -> vector<16x16xf32>
    "tpu.trace_stop"() : () -> ()
    %53 = vector.extract_strided_slice %46 {offsets = [0, 16], sizes = [16, 8], strides = [1, 1]} : vector<16x96xf32> to vector<16x8xf32>
    %54 = vector.extract_strided_slice %46 {offsets = [0, 48], sizes = [16, 8], strides = [1, 1]} : vector<16x96xf32> to vector<16x8xf32>
    "tpu.trace_start"() <{level = 10 : i32, message = "qd,kd->qk"}> : () -> ()
    %cst_26 = arith.constant dense<0.000000e+00> : vector<16x16xf32>
    %55 = tpu.matmul %53, %54, %cst_26 {dimension_numbers = #tpu.dot_dimension_numbers<[1], [1], [0], [0], [0, 0, 1, 0], [], []>} : vector<16x8xf32>, vector<16x8xf32>, vector<16x16xf32> -> vector<16x16xf32>
    "tpu.trace_stop"() : () -> ()
    %56 = vector.extract_strided_slice %46 {offsets = [0, 24], sizes = [16, 8], strides = [1, 1]} : vector<16x96xf32> to vector<16x8xf32>
    %57 = vector.extract_strided_slice %46 {offsets = [0, 56], sizes = [16, 8], strides = [1, 1]} : vector<16x96xf32> to vector<16x8xf32>
    "tpu.trace_start"() <{level = 10 : i32, message = "qd,kd->qk"}> : () -> ()
    %cst_27 = arith.constant dense<0.000000e+00> : vector<16x16xf32>
    %58 = tpu.matmul %56, %57, %cst_27 {dimension_numbers = #tpu.dot_dimension_numbers<[1], [1], [0], [0], [0, 0, 1, 0], [], []>} : vector<16x8xf32>, vector<16x8xf32>, vector<16x16xf32> -> vector<16x16xf32>
    "tpu.trace_stop"() : () -> ()
    %59 = tpu.concatenate %49, %52, %55, %58 in 0 : vector<16x16xf32>, vector<16x16xf32>, vector<16x16xf32>, vector<16x16xf32> -> vector<64x16xf32>
    %60 = arith.addf %59, %29 : vector<64x16xf32>
    %cst_28 = arith.constant dense<0xFF800000> : vector<64xf32>
    %61 = vector.multi_reduction <maximumf>, %60, %cst_28 [1] : vector<64x16xf32> to vector<64xf32>
    %62 = vector.shape_cast %61 : vector<64xf32> to vector<64x1xf32>
    %63 = vector.broadcast %62 : vector<64x1xf32> to vector<64x16xf32>
    %64 = arith.subf %60, %63 : vector<64x16xf32>
    %65 = math.exp %64 : vector<64x16xf32>
    %cst_29 = arith.constant dense<0.000000e+00> : vector<64xf32>
    %66 = vector.multi_reduction <add>, %65, %cst_29 [1] : vector<64x16xf32> to vector<64xf32>
    %67 = vector.shape_cast %66 : vector<64xf32> to vector<64x1xf32>
    %68 = tpu.reciprocal %67 : vector<64x1xf32> -> vector<64x1xf32>
    %69 = vector.extract_strided_slice %65 {offsets = [0, 0], sizes = [16, 16], strides = [1, 1]} : vector<64x16xf32> to vector<16x16xf32>
    %70 = vector.extract_strided_slice %46 {offsets = [0, 64], sizes = [16, 8], strides = [1, 1]} : vector<16x96xf32> to vector<16x8xf32>
    %cst_30 = arith.constant dense<0.000000e+00> : vector<16x8xf32>
    %71 = tpu.matmul %69, %70, %cst_30 {dimension_numbers = #tpu.dot_dimension_numbers<[1], [0], [0], [1], [0, 0, 1, 1], [], []>} : vector<16x16xf32>, vector<16x8xf32>, vector<16x8xf32> -> vector<16x8xf32>
    %72 = vector.extract_strided_slice %68 {offsets = [0, 0], sizes = [16, 1], strides = [1, 1]} : vector<64x1xf32> to vector<16x1xf32>
    %73 = vector.broadcast %72 : vector<16x1xf32> to vector<16x8xf32>
    %74 = arith.mulf %71, %73 : vector<16x8xf32>
    %75 = vector.extract_strided_slice %65 {offsets = [16, 0], sizes = [16, 16], strides = [1, 1]} : vector<64x16xf32> to vector<16x16xf32>
    %76 = vector.extract_strided_slice %46 {offsets = [0, 72], sizes = [16, 8], strides = [1, 1]} : vector<16x96xf32> to vector<16x8xf32>
    %cst_31 = arith.constant dense<0.000000e+00> : vector<16x8xf32>
    %77 = tpu.matmul %75, %76, %cst_31 {dimension_numbers = #tpu.dot_dimension_numbers<[1], [0], [0], [1], [0, 0, 1, 1], [], []>} : vector<16x16xf32>, vector<16x8xf32>, vector<16x8xf32> -> vector<16x8xf32>
    %78 = vector.extract_strided_slice %68 {offsets = [16, 0], sizes = [16, 1], strides = [1, 1]} : vector<64x1xf32> to vector<16x1xf32>
    %79 = vector.broadcast %78 : vector<16x1xf32> to vector<16x8xf32>
    %80 = arith.mulf %77, %79 : vector<16x8xf32>
    %81 = vector.extract_strided_slice %65 {offsets = [32, 0], sizes = [16, 16], strides = [1, 1]} : vector<64x16xf32> to vector<16x16xf32>
    %82 = vector.extract_strided_slice %46 {offsets = [0, 80], sizes = [16, 8], strides = [1, 1]} : vector<16x96xf32> to vector<16x8xf32>
    %cst_32 = arith.constant dense<0.000000e+00> : vector<16x8xf32>
    %83 = tpu.matmul %81, %82, %cst_32 {dimension_numbers = #tpu.dot_dimension_numbers<[1], [0], [0], [1], [0, 0, 1, 1], [], []>} : vector<16x16xf32>, vector<16x8xf32>, vector<16x8xf32> -> vector<16x8xf32>
    %84 = vector.extract_strided_slice %68 {offsets = [32, 0], sizes = [16, 1], strides = [1, 1]} : vector<64x1xf32> to vector<16x1xf32>
    %85 = vector.broadcast %84 : vector<16x1xf32> to vector<16x8xf32>
    %86 = arith.mulf %83, %85 : vector<16x8xf32>
    %87 = vector.extract_strided_slice %65 {offsets = [48, 0], sizes = [16, 16], strides = [1, 1]} : vector<64x16xf32> to vector<16x16xf32>
    %88 = vector.extract_strided_slice %46 {offsets = [0, 88], sizes = [16, 8], strides = [1, 1]} : vector<16x96xf32> to vector<16x8xf32>
    %cst_33 = arith.constant dense<0.000000e+00> : vector<16x8xf32>
    %89 = tpu.matmul %87, %88, %cst_33 {dimension_numbers = #tpu.dot_dimension_numbers<[1], [0], [0], [1], [0, 0, 1, 1], [], []>} : vector<16x16xf32>, vector<16x8xf32>, vector<16x8xf32> -> vector<16x8xf32>
    %90 = vector.extract_strided_slice %68 {offsets = [48, 0], sizes = [16, 1], strides = [1, 1]} : vector<64x1xf32> to vector<16x1xf32>
    %91 = vector.broadcast %90 : vector<16x1xf32> to vector<16x8xf32>
    %92 = arith.mulf %89, %91 : vector<16x8xf32>
    %93 = tpu.concatenate %74, %80, %86, %92 in 1 : vector<16x8xf32>, vector<16x8xf32>, vector<16x8xf32>, vector<16x8xf32> -> vector<16x32xf32>
    %cst_34 = arith.constant dense<0.000000e+00> : vector<16x32xf32>
    %94 = tpu.matmul %93, %33, %cst_34 {dimension_numbers = #tpu.dot_dimension_numbers<[1], [0], [0], [1], [0, 0, 1, 1], [], []>} : vector<16x32xf32>, vector<32x32xf32>, vector<16x32xf32> -> vector<16x32xf32>
    %95 = vector.broadcast %39 : vector<1x32xf32> to vector<16x32xf32>
    %96 = arith.addf %94, %95 : vector<16x32xf32>
    %97 = arith.addf %96, %9 : vector<16x32xf32>
    %cst_35 = arith.constant dense<0.000000e+00> : vector<16xf32>
    %98 = vector.multi_reduction <add>, %97, %cst_35 [1] : vector<16x32xf32> to vector<16xf32>
    %99 = vector.shape_cast %98 : vector<16xf32> to vector<16x1xf32>
    %cst_36 = arith.constant 3.200000e+01 : f32
    %100 = vector.broadcast %cst_36 : f32 to vector<16x1xf32>
    %101 = arith.divf %99, %100 : vector<16x1xf32>
    %102 = vector.broadcast %101 : vector<16x1xf32> to vector<16x32xf32>
    %103 = arith.subf %97, %102 : vector<16x32xf32>
    %104 = arith.mulf %103, %103 : vector<16x32xf32>
    %cst_37 = arith.constant dense<0.000000e+00> : vector<16xf32>
    %105 = vector.multi_reduction <add>, %104, %cst_37 [1] : vector<16x32xf32> to vector<16xf32>
    %106 = vector.shape_cast %105 : vector<16xf32> to vector<16x1xf32>
    %cst_38 = arith.constant 3.200000e+01 : f32
    %107 = vector.broadcast %cst_38 : f32 to vector<16x1xf32>
    %108 = arith.divf %106, %107 : vector<16x1xf32>
    %109 = vector.broadcast %101 : vector<16x1xf32> to vector<16x32xf32>
    %110 = arith.subf %97, %109 : vector<16x32xf32>
    %cst_39 = arith.constant 9.99999974E-6 : f32
    %111 = vector.broadcast %cst_39 : f32 to vector<16x1xf32>
    %112 = arith.addf %108, %111 : vector<16x1xf32>
    %113 = math.rsqrt %112 : vector<16x1xf32>
    %114 = vector.broadcast %113 : vector<16x1xf32> to vector<16x32xf32>
    %115 = arith.mulf %110, %114 : vector<16x32xf32>
    %116 = vector.broadcast %40 : vector<1x32xf32> to vector<16x32xf32>
    %117 = arith.mulf %115, %116 : vector<16x32xf32>
    %118 = vector.broadcast %41 : vector<1x32xf32> to vector<16x32xf32>
    %119 = arith.addf %117, %118 : vector<16x32xf32>
    %cst_40 = arith.constant dense<0.000000e+00> : vector<16x128xf32>
    %120 = tpu.matmul %119, %34, %cst_40 {dimension_numbers = #tpu.dot_dimension_numbers<[1], [0], [0], [1], [0, 0, 1, 1], [], []>} : vector<16x32xf32>, vector<32x128xf32>, vector<16x128xf32> -> vector<16x128xf32>
    %121 = vector.broadcast %45 : vector<1x128xf32> to vector<16x128xf32>
    %122 = arith.addf %120, %121 : vector<16x128xf32>
    %cst_41 = arith.constant 0.000000e+00 : f32
    %123 = vector.broadcast %cst_41 : f32 to vector<16x128xf32>
    %124 = arith.maximumf %122, %123 : vector<16x128xf32>
    %cst_42 = arith.constant dense<0.000000e+00> : vector<16x32xf32>
    %125 = tpu.matmul %124, %36, %cst_42 {dimension_numbers = #tpu.dot_dimension_numbers<[1], [0], [0], [1], [0, 0, 1, 1], [], []>} : vector<16x128xf32>, vector<128x32xf32>, vector<16x32xf32> -> vector<16x32xf32>
    %126 = vector.broadcast %42 : vector<1x32xf32> to vector<16x32xf32>
    %127 = arith.addf %125, %126 : vector<16x32xf32>
    %128 = arith.addf %127, %119 : vector<16x32xf32>
    %cst_43 = arith.constant dense<0.000000e+00> : vector<16xf32>
    %129 = vector.multi_reduction <add>, %128, %cst_43 [1] : vector<16x32xf32> to vector<16xf32>
    %130 = vector.shape_cast %129 : vector<16xf32> to vector<16x1xf32>
    %cst_44 = arith.constant 3.200000e+01 : f32
    %131 = vector.broadcast %cst_44 : f32 to vector<16x1xf32>
    %132 = arith.divf %130, %131 : vector<16x1xf32>
    %133 = vector.broadcast %132 : vector<16x1xf32> to vector<16x32xf32>
    %134 = arith.subf %128, %133 : vector<16x32xf32>
    %135 = arith.mulf %134, %134 : vector<16x32xf32>
    %cst_45 = arith.constant dense<0.000000e+00> : vector<16xf32>
    %136 = vector.multi_reduction <add>, %135, %cst_45 [1] : vector<16x32xf32> to vector<16xf32>
    %137 = vector.shape_cast %136 : vector<16xf32> to vector<16x1xf32>
    %cst_46 = arith.constant 3.200000e+01 : f32
    %138 = vector.broadcast %cst_46 : f32 to vector<16x1xf32>
    %139 = arith.divf %137, %138 : vector<16x1xf32>
    %140 = vector.broadcast %132 : vector<16x1xf32> to vector<16x32xf32>
    %141 = arith.subf %128, %140 : vector<16x32xf32>
    %cst_47 = arith.constant 9.99999974E-6 : f32
    %142 = vector.broadcast %cst_47 : f32 to vector<16x1xf32>
    %143 = arith.addf %139, %142 : vector<16x1xf32>
    %144 = math.rsqrt %143 : vector<16x1xf32>
    %145 = vector.broadcast %144 : vector<16x1xf32> to vector<16x32xf32>
    %146 = arith.mulf %141, %145 : vector<16x32xf32>
    %147 = vector.broadcast %43 : vector<1x32xf32> to vector<16x32xf32>
    %148 = arith.mulf %146, %147 : vector<16x32xf32>
    %149 = vector.broadcast %44 : vector<1x32xf32> to vector<16x32xf32>
    %150 = arith.addf %148, %149 : vector<16x32xf32>
    %c1 = arith.constant 1 : index
    %c0_48 = arith.constant 0 : index
    %c0_49 = arith.constant 0 : index
    %151 = vector.load %arg3[%c1, %c0_48, %c0_49] : memref<2x32x256xf32, #tpu.memory_space<vmem>>, vector<1x32x256xf32>
    %152 = vector.shape_cast %151 : vector<1x32x256xf32> to vector<32x256xf32>
    %153 = vector.extract_strided_slice %152 {offsets = [0, 0], sizes = [32, 96], strides = [1, 1]} : vector<32x256xf32> to vector<32x96xf32>
    %154 = vector.extract_strided_slice %152 {offsets = [0, 96], sizes = [32, 32], strides = [1, 1]} : vector<32x256xf32> to vector<32x32xf32>
    %155 = vector.extract_strided_slice %152 {offsets = [0, 128], sizes = [32, 128], strides = [1, 1]} : vector<32x256xf32> to vector<32x128xf32>
    %c1_50 = arith.constant 1 : index
    %c0_51 = arith.constant 0 : index
    %c0_52 = arith.constant 0 : index
    %156 = vector.load %arg4[%c1_50, %c0_51, %c0_52] : memref<2x128x32xf32, #tpu.memory_space<vmem>>, vector<1x128x32xf32>
    %157 = vector.shape_cast %156 : vector<1x128x32xf32> to vector<128x32xf32>
    %c1_53 = arith.constant 1 : index
    %c0_54 = arith.constant 0 : index
    %c0_55 = arith.constant 0 : index
    %158 = vector.load %arg5[%c1_53, %c0_54, %c0_55] : memref<2x8x160xf32, #tpu.memory_space<vmem>>, vector<1x8x160xf32>
    %159 = vector.shape_cast %158 : vector<1x8x160xf32> to vector<8x160xf32>
    %160 = vector.extract_strided_slice %159 {offsets = [0, 0], sizes = [1, 32], strides = [1, 1]} : vector<8x160xf32> to vector<1x32xf32>
    %161 = vector.extract_strided_slice %159 {offsets = [1, 0], sizes = [1, 32], strides = [1, 1]} : vector<8x160xf32> to vector<1x32xf32>
    %162 = vector.extract_strided_slice %159 {offsets = [2, 0], sizes = [1, 32], strides = [1, 1]} : vector<8x160xf32> to vector<1x32xf32>
    %163 = vector.extract_strided_slice %159 {offsets = [3, 0], sizes = [1, 32], strides = [1, 1]} : vector<8x160xf32> to vector<1x32xf32>
    %164 = vector.extract_strided_slice %159 {offsets = [4, 0], sizes = [1, 32], strides = [1, 1]} : vector<8x160xf32> to vector<1x32xf32>
    %165 = vector.extract_strided_slice %159 {offsets = [5, 0], sizes = [1, 32], strides = [1, 1]} : vector<8x160xf32> to vector<1x32xf32>
    %166 = vector.extract_strided_slice %159 {offsets = [0, 32], sizes = [1, 128], strides = [1, 1]} : vector<8x160xf32> to vector<1x128xf32>
    %cst_56 = arith.constant dense<0.000000e+00> : vector<16x96xf32>
    %167 = tpu.matmul %150, %153, %cst_56 {dimension_numbers = #tpu.dot_dimension_numbers<[1], [0], [0], [1], [0, 0, 1, 1], [], []>} : vector<16x32xf32>, vector<32x96xf32>, vector<16x96xf32> -> vector<16x96xf32>
    %168 = vector.extract_strided_slice %167 {offsets = [0, 0], sizes = [16, 8], strides = [1, 1]} : vector<16x96xf32> to vector<16x8xf32>
    %169 = vector.extract_strided_slice %167 {offsets = [0, 32], sizes = [16, 8], strides = [1, 1]} : vector<16x96xf32> to vector<16x8xf32>
    "tpu.trace_start"() <{level = 10 : i32, message = "qd,kd->qk"}> : () -> ()
    %cst_57 = arith.constant dense<0.000000e+00> : vector<16x16xf32>
    %170 = tpu.matmul %168, %169, %cst_57 {dimension_numbers = #tpu.dot_dimension_numbers<[1], [1], [0], [0], [0, 0, 1, 0], [], []>} : vector<16x8xf32>, vector<16x8xf32>, vector<16x16xf32> -> vector<16x16xf32>
    "tpu.trace_stop"() : () -> ()
    %171 = vector.extract_strided_slice %167 {offsets = [0, 8], sizes = [16, 8], strides = [1, 1]} : vector<16x96xf32> to vector<16x8xf32>
    %172 = vector.extract_strided_slice %167 {offsets = [0, 40], sizes = [16, 8], strides = [1, 1]} : vector<16x96xf32> to vector<16x8xf32>
    "tpu.trace_start"() <{level = 10 : i32, message = "qd,kd->qk"}> : () -> ()
    %cst_58 = arith.constant dense<0.000000e+00> : vector<16x16xf32>
    %173 = tpu.matmul %171, %172, %cst_58 {dimension_numbers = #tpu.dot_dimension_numbers<[1], [1], [0], [0], [0, 0, 1, 0], [], []>} : vector<16x8xf32>, vector<16x8xf32>, vector<16x16xf32> -> vector<16x16xf32>
    "tpu.trace_stop"() : () -> ()
    %174 = vector.extract_strided_slice %167 {offsets = [0, 16], sizes = [16, 8], strides = [1, 1]} : vector<16x96xf32> to vector<16x8xf32>
    %175 = vector.extract_strided_slice %167 {offsets = [0, 48], sizes = [16, 8], strides = [1, 1]} : vector<16x96xf32> to vector<16x8xf32>
    "tpu.trace_start"() <{level = 10 : i32, message = "qd,kd->qk"}> : () -> ()
    %cst_59 = arith.constant dense<0.000000e+00> : vector<16x16xf32>
    %176 = tpu.matmul %174, %175, %cst_59 {dimension_numbers = #tpu.dot_dimension_numbers<[1], [1], [0], [0], [0, 0, 1, 0], [], []>} : vector<16x8xf32>, vector<16x8xf32>, vector<16x16xf32> -> vector<16x16xf32>
    "tpu.trace_stop"() : () -> ()
    %177 = vector.extract_strided_slice %167 {offsets = [0, 24], sizes = [16, 8], strides = [1, 1]} : vector<16x96xf32> to vector<16x8xf32>
    %178 = vector.extract_strided_slice %167 {offsets = [0, 56], sizes = [16, 8], strides = [1, 1]} : vector<16x96xf32> to vector<16x8xf32>
    "tpu.trace_start"() <{level = 10 : i32, message = "qd,kd->qk"}> : () -> ()
    %cst_60 = arith.constant dense<0.000000e+00> : vector<16x16xf32>
    %179 = tpu.matmul %177, %178, %cst_60 {dimension_numbers = #tpu.dot_dimension_numbers<[1], [1], [0], [0], [0, 0, 1, 0], [], []>} : vector<16x8xf32>, vector<16x8xf32>, vector<16x16xf32> -> vector<16x16xf32>
    "tpu.trace_stop"() : () -> ()
    %180 = tpu.concatenate %170, %173, %176, %179 in 0 : vector<16x16xf32>, vector<16x16xf32>, vector<16x16xf32>, vector<16x16xf32> -> vector<64x16xf32>
    %181 = arith.addf %180, %29 : vector<64x16xf32>
    %cst_61 = arith.constant dense<0xFF800000> : vector<64xf32>
    %182 = vector.multi_reduction <maximumf>, %181, %cst_61 [1] : vector<64x16xf32> to vector<64xf32>
    %183 = vector.shape_cast %182 : vector<64xf32> to vector<64x1xf32>
    %184 = vector.broadcast %183 : vector<64x1xf32> to vector<64x16xf32>
    %185 = arith.subf %181, %184 : vector<64x16xf32>
    %186 = math.exp %185 : vector<64x16xf32>
    %cst_62 = arith.constant dense<0.000000e+00> : vector<64xf32>
    %187 = vector.multi_reduction <add>, %186, %cst_62 [1] : vector<64x16xf32> to vector<64xf32>
    %188 = vector.shape_cast %187 : vector<64xf32> to vector<64x1xf32>
    %189 = tpu.reciprocal %188 : vector<64x1xf32> -> vector<64x1xf32>
    %190 = vector.extract_strided_slice %186 {offsets = [0, 0], sizes = [16, 16], strides = [1, 1]} : vector<64x16xf32> to vector<16x16xf32>
    %191 = vector.extract_strided_slice %167 {offsets = [0, 64], sizes = [16, 8], strides = [1, 1]} : vector<16x96xf32> to vector<16x8xf32>
    %cst_63 = arith.constant dense<0.000000e+00> : vector<16x8xf32>
    %192 = tpu.matmul %190, %191, %cst_63 {dimension_numbers = #tpu.dot_dimension_numbers<[1], [0], [0], [1], [0, 0, 1, 1], [], []>} : vector<16x16xf32>, vector<16x8xf32>, vector<16x8xf32> -> vector<16x8xf32>
    %193 = vector.extract_strided_slice %189 {offsets = [0, 0], sizes = [16, 1], strides = [1, 1]} : vector<64x1xf32> to vector<16x1xf32>
    %194 = vector.broadcast %193 : vector<16x1xf32> to vector<16x8xf32>
    %195 = arith.mulf %192, %194 : vector<16x8xf32>
    %196 = vector.extract_strided_slice %186 {offsets = [16, 0], sizes = [16, 16], strides = [1, 1]} : vector<64x16xf32> to vector<16x16xf32>
    %197 = vector.extract_strided_slice %167 {offsets = [0, 72], sizes = [16, 8], strides = [1, 1]} : vector<16x96xf32> to vector<16x8xf32>
    %cst_64 = arith.constant dense<0.000000e+00> : vector<16x8xf32>
    %198 = tpu.matmul %196, %197, %cst_64 {dimension_numbers = #tpu.dot_dimension_numbers<[1], [0], [0], [1], [0, 0, 1, 1], [], []>} : vector<16x16xf32>, vector<16x8xf32>, vector<16x8xf32> -> vector<16x8xf32>
    %199 = vector.extract_strided_slice %189 {offsets = [16, 0], sizes = [16, 1], strides = [1, 1]} : vector<64x1xf32> to vector<16x1xf32>
    %200 = vector.broadcast %199 : vector<16x1xf32> to vector<16x8xf32>
    %201 = arith.mulf %198, %200 : vector<16x8xf32>
    %202 = vector.extract_strided_slice %186 {offsets = [32, 0], sizes = [16, 16], strides = [1, 1]} : vector<64x16xf32> to vector<16x16xf32>
    %203 = vector.extract_strided_slice %167 {offsets = [0, 80], sizes = [16, 8], strides = [1, 1]} : vector<16x96xf32> to vector<16x8xf32>
    %cst_65 = arith.constant dense<0.000000e+00> : vector<16x8xf32>
    %204 = tpu.matmul %202, %203, %cst_65 {dimension_numbers = #tpu.dot_dimension_numbers<[1], [0], [0], [1], [0, 0, 1, 1], [], []>} : vector<16x16xf32>, vector<16x8xf32>, vector<16x8xf32> -> vector<16x8xf32>
    %205 = vector.extract_strided_slice %189 {offsets = [32, 0], sizes = [16, 1], strides = [1, 1]} : vector<64x1xf32> to vector<16x1xf32>
    %206 = vector.broadcast %205 : vector<16x1xf32> to vector<16x8xf32>
    %207 = arith.mulf %204, %206 : vector<16x8xf32>
    %208 = vector.extract_strided_slice %186 {offsets = [48, 0], sizes = [16, 16], strides = [1, 1]} : vector<64x16xf32> to vector<16x16xf32>
    %209 = vector.extract_strided_slice %167 {offsets = [0, 88], sizes = [16, 8], strides = [1, 1]} : vector<16x96xf32> to vector<16x8xf32>
    %cst_66 = arith.constant dense<0.000000e+00> : vector<16x8xf32>
    %210 = tpu.matmul %208, %209, %cst_66 {dimension_numbers = #tpu.dot_dimension_numbers<[1], [0], [0], [1], [0, 0, 1, 1], [], []>} : vector<16x16xf32>, vector<16x8xf32>, vector<16x8xf32> -> vector<16x8xf32>
    %211 = vector.extract_strided_slice %189 {offsets = [48, 0], sizes = [16, 1], strides = [1, 1]} : vector<64x1xf32> to vector<16x1xf32>
    %212 = vector.broadcast %211 : vector<16x1xf32> to vector<16x8xf32>
    %213 = arith.mulf %210, %212 : vector<16x8xf32>
    %214 = tpu.concatenate %195, %201, %207, %213 in 1 : vector<16x8xf32>, vector<16x8xf32>, vector<16x8xf32>, vector<16x8xf32> -> vector<16x32xf32>
    %cst_67 = arith.constant dense<0.000000e+00> : vector<16x32xf32>
    %215 = tpu.matmul %214, %154, %cst_67 {dimension_numbers = #tpu.dot_dimension_numbers<[1], [0], [0], [1], [0, 0, 1, 1], [], []>} : vector<16x32xf32>, vector<32x32xf32>, vector<16x32xf32> -> vector<16x32xf32>
    %216 = vector.broadcast %160 : vector<1x32xf32> to vector<16x32xf32>
    %217 = arith.addf %215, %216 : vector<16x32xf32>
    %218 = arith.addf %217, %150 : vector<16x32xf32>
    %cst_68 = arith.constant dense<0.000000e+00> : vector<16xf32>
    %219 = vector.multi_reduction <add>, %218, %cst_68 [1] : vector<16x32xf32> to vector<16xf32>
    %220 = vector.shape_cast %219 : vector<16xf32> to vector<16x1xf32>
    %cst_69 = arith.constant 3.200000e+01 : f32
    %221 = vector.broadcast %cst_69 : f32 to vector<16x1xf32>
    %222 = arith.divf %220, %221 : vector<16x1xf32>
    %223 = vector.broadcast %222 : vector<16x1xf32> to vector<16x32xf32>
    %224 = arith.subf %218, %223 : vector<16x32xf32>
    %225 = arith.mulf %224, %224 : vector<16x32xf32>
    %cst_70 = arith.constant dense<0.000000e+00> : vector<16xf32>
    %226 = vector.multi_reduction <add>, %225, %cst_70 [1] : vector<16x32xf32> to vector<16xf32>
    %227 = vector.shape_cast %226 : vector<16xf32> to vector<16x1xf32>
    %cst_71 = arith.constant 3.200000e+01 : f32
    %228 = vector.broadcast %cst_71 : f32 to vector<16x1xf32>
    %229 = arith.divf %227, %228 : vector<16x1xf32>
    %230 = vector.broadcast %222 : vector<16x1xf32> to vector<16x32xf32>
    %231 = arith.subf %218, %230 : vector<16x32xf32>
    %cst_72 = arith.constant 9.99999974E-6 : f32
    %232 = vector.broadcast %cst_72 : f32 to vector<16x1xf32>
    %233 = arith.addf %229, %232 : vector<16x1xf32>
    %234 = math.rsqrt %233 : vector<16x1xf32>
    %235 = vector.broadcast %234 : vector<16x1xf32> to vector<16x32xf32>
    %236 = arith.mulf %231, %235 : vector<16x32xf32>
    %237 = vector.broadcast %161 : vector<1x32xf32> to vector<16x32xf32>
    %238 = arith.mulf %236, %237 : vector<16x32xf32>
    %239 = vector.broadcast %162 : vector<1x32xf32> to vector<16x32xf32>
    %240 = arith.addf %238, %239 : vector<16x32xf32>
    %cst_73 = arith.constant dense<0.000000e+00> : vector<16x128xf32>
    %241 = tpu.matmul %240, %155, %cst_73 {dimension_numbers = #tpu.dot_dimension_numbers<[1], [0], [0], [1], [0, 0, 1, 1], [], []>} : vector<16x32xf32>, vector<32x128xf32>, vector<16x128xf32> -> vector<16x128xf32>
    %242 = vector.broadcast %166 : vector<1x128xf32> to vector<16x128xf32>
    %243 = arith.addf %241, %242 : vector<16x128xf32>
    %cst_74 = arith.constant 0.000000e+00 : f32
    %244 = vector.broadcast %cst_74 : f32 to vector<16x128xf32>
    %245 = arith.maximumf %243, %244 : vector<16x128xf32>
    %cst_75 = arith.constant dense<0.000000e+00> : vector<16x32xf32>
    %246 = tpu.matmul %245, %157, %cst_75 {dimension_numbers = #tpu.dot_dimension_numbers<[1], [0], [0], [1], [0, 0, 1, 1], [], []>} : vector<16x128xf32>, vector<128x32xf32>, vector<16x32xf32> -> vector<16x32xf32>
    %247 = vector.broadcast %163 : vector<1x32xf32> to vector<16x32xf32>
    %248 = arith.addf %246, %247 : vector<16x32xf32>
    %249 = arith.addf %248, %240 : vector<16x32xf32>
    %cst_76 = arith.constant dense<0.000000e+00> : vector<16xf32>
    %250 = vector.multi_reduction <add>, %249, %cst_76 [1] : vector<16x32xf32> to vector<16xf32>
    %251 = vector.shape_cast %250 : vector<16xf32> to vector<16x1xf32>
    %cst_77 = arith.constant 3.200000e+01 : f32
    %252 = vector.broadcast %cst_77 : f32 to vector<16x1xf32>
    %253 = arith.divf %251, %252 : vector<16x1xf32>
    %254 = vector.broadcast %253 : vector<16x1xf32> to vector<16x32xf32>
    %255 = arith.subf %249, %254 : vector<16x32xf32>
    %256 = arith.mulf %255, %255 : vector<16x32xf32>
    %cst_78 = arith.constant dense<0.000000e+00> : vector<16xf32>
    %257 = vector.multi_reduction <add>, %256, %cst_78 [1] : vector<16x32xf32> to vector<16xf32>
    %258 = vector.shape_cast %257 : vector<16xf32> to vector<16x1xf32>
    %cst_79 = arith.constant 3.200000e+01 : f32
    %259 = vector.broadcast %cst_79 : f32 to vector<16x1xf32>
    %260 = arith.divf %258, %259 : vector<16x1xf32>
    %261 = vector.broadcast %253 : vector<16x1xf32> to vector<16x32xf32>
    %262 = arith.subf %249, %261 : vector<16x32xf32>
    %cst_80 = arith.constant 9.99999974E-6 : f32
    %263 = vector.broadcast %cst_80 : f32 to vector<16x1xf32>
    %264 = arith.addf %260, %263 : vector<16x1xf32>
    %265 = math.rsqrt %264 : vector<16x1xf32>
    %266 = vector.broadcast %265 : vector<16x1xf32> to vector<16x32xf32>
    %267 = arith.mulf %262, %266 : vector<16x32xf32>
    %268 = vector.broadcast %164 : vector<1x32xf32> to vector<16x32xf32>
    %269 = arith.mulf %267, %268 : vector<16x32xf32>
    %270 = vector.broadcast %165 : vector<1x32xf32> to vector<16x32xf32>
    %271 = arith.addf %269, %270 : vector<16x32xf32>
    %c0_81 = arith.constant 0 : index
    %c0_82 = arith.constant 0 : index
    %272 = vector.load %arg6[%c0_81, %c0_82] : memref<16x32xf32, #tpu.memory_space<vmem>>, vector<16x32xf32>
    tpu.vector_store %arg6[%c0_81, %c0_82], %271 {strides = array<i32>} : memref<16x32xf32, #tpu.memory_space<vmem>>, vector<16x32xf32>,
    return
  }
}

</mosaic_0001>

<bundles_post_ra>
// kernel: encoder_forward.1
= control target key start
LH: loop header
LB: loop body
LE: loop exit
PB: predicated region body
PF: predicated region fallthrough
CT: control target
= control target key end

     0   :  { %v1993_v2 = vmov 0   ;;  %s2698_s0 = inlined_call_operand.vmem [shape: s32[16,1], index: 0, kind: input, shape index: {}]   ;;  %s2699_s1 = inlined_call_operand.vmem [shape: f32[2,8,8], index: 1, kind: input, shape index: {}]   ;;  %s2700_s2 = inlined_call_operand.vmem [shape: f32[80,32], index: 2, kind: input, shape index: {}]   ;;  %s2701_s3 = inlined_call_operand.vmem [shape: f32[2,32,256], index: 3, kind: input, shape index: {}]   ;;  %s2702_s4 = inlined_call_operand.vmem [shape: f32[2,128,32], index: 4, kind: input, shape index: {}]   ;;  %s2703_s5 = inlined_call_operand.vmem [shape: f32[2,8,160], index: 5, kind: input, shape index: {}]   ;;  %s2704_s6 = inlined_call_operand.hbm [shape: f32[16,32], index: 6, kind: output, shape index: {}]  }
   0x1   :  { %v24_v0 = vld [vmem:[%s2698_s0] sm:$0xff]  ;;  %v47_v1 = vld [vmem:[%s2700_s2 + $0x38] sm:$0xff]  ;;  %1824 = vset.pattern.permute.xlu0 %v1993_v2  ;;  %v46_v3 = vld [vmem:[%s2700_s2 + $0x30] sm:$0xff] }
   0x2   :  { %65 = vmatpush.msra.mxu0 %v47_v1  ;;  %29 = vperm.xlu0 %1824, %v24_v0   ;;  %v45_v4 = vld [vmem:[%s2700_s2 + $0x28] sm:$0xff] }
   0x4   :  { %66 = vmatpush.msra.mxu0 %v46_v3 }
   0x5   :  { %11 = vsyncpa [#allocation3], 0  ;;  %v44_v5 = vld [vmem:[%s2700_s2 + $0x20] sm:$0xff]  ;;  %v43_v6 = vld [vmem:[%s2700_s2 + $0x18] sm:$0xff]  ;;  %v26_v14 = vlaneseq  ;;  %vm50_vm0 = vcmask 523264   ;;  %v1994_v17 = vmov 0.0  }
   0x6   :  { %67 = vmatpush.msra.mxu0 %v45_v4  ;;  %v25_v7 = vld [vmem:[%s2698_s0 + $0x8] sm:$0xff]  ;;  %v42_v8 = vld [vmem:[%s2700_s2 + $0x10] sm:$0xff]  ;;  %v40_v10 = vld [vmem:[%s2700_s2] sm:$0xff]  ;;  %vm119_vm3 = vcmask 261120   ;;  %s1995_s28 = smov 88   ;;  %s1996_s29 = smov 72  }
   0x7   :  { %v41_v9 = vld [vmem:[%s2700_s2 + $0x8] sm:$0xff]  ;;  %v2082_v11 = vld [vmem:[%s2701_s3 + $0x30] sm:$0xff]  ;;  %v2087_v12 = vld [vmem:[%s2701_s3 + $0x20] sm:$0xff]  ;;  %v27_v15 = vand.u32 127, %v26_v14  ;;  %s1997_s30 = smov 120   ;;  %s1999_s7 = smov 104  }
   0x8   :  { %68 = vmatpush.msra.mxu0 %v44_v5  ;;  %138 = vmatpush.msra.mxu1 %v2082_v11  ;;  %v1845_v13 = vpack.i.bf16 %v2087_v12, %v2082_v11  ;;  %v2096_v21 = vld [vmem:[%s2701_s3 + $0x10] sm:$0xff]  ;;  %v2102_v22 = vld [vmem:[%s2701_s3] sm:$0xff]  ;;  %v49_v27 = vld [vmem:[%s2700_s2 + $0x48] sm:$0xff]  ;;  %s2000_s8 = smov 112   ;;  %s2001_s9 = smov 80   ;;  %vm84_vm4 = vcmask 64512  }
   0x9   :  { %v1850_v23 = vpack.i.bf16 %v2102_v22, %v2096_v21  ;;  %v48_v24 = vld [vmem:[%s2700_s2 + $0x40] sm:$0xff]  ;;  %s1998_s2 = smov 96   ;;  %v81_v36 = vld [vmem:[%s2699_s1 + $0x8] sm:$0xff]  ;;  %v2002_v37 = vmov -1e+20   ;;  %s2003_s12 = smov 8  }
   0xa   :  { %69 = vmatpush.msra.mxu0 %v43_v6  ;;  %32 = vperm.xlu0 %1824, %v25_v7   ;;  %vm86_vm5 = vcmp.ne.f32.partialorder %v81_v36, 0.0  ;;  %v80_v49 = vld [vmem:[%s2699_s1] sm:$0xff]  ;;  %vm311_vm7 = vcmask 130048   ;;  %s2004_s1 = smov 40   ;;  %s2005_s15 = smov 56  }
   0xb   :  { %139 = vmatpush.msra.mxu1 %v2087_v12  ;;  %v87_v38 = vsel %vm86_vm5, 0.0, %v2002_v37  ;;  %vm82_vm6 = vcmp.ne.f32.partialorder %v80_v49, 0.0  ;;  %s2006_s16 = smov 48   ;;  %s2007_s17 = smov 64  }
   0xc   :  { %70 = vmatpush.msra.mxu0 %v42_v8  ;;  %v83_v51 = vsel %vm82_vm6, 0.0, %v2002_v37  ;;  %s2008_s0 = smov 32   ;;  %s2009_s18 = smov 24  }
   0xd   :  { %140 = vmatpush.msra.mxu1 %v2096_v21  ;;  %v2179_v52 = vsel %vm84_vm4, %v83_v51, -1e+20  ;;  %s2010_s19 = smov 16   ;;  %s1701_s10 = sshll.u32 %s2704_s6, 4  ;;  %s1702_s10 = int_to_ptr.hbm [resolvable:$true] %s1701_s10 }
   0xe   :  { %71 = vmatpush.msra.mxu0 %v41_v9  ;;  %s2013_s11 = smov 128  }
   0xf   :  { %141 = vmatpush.msra.mxu1 %v2102_v22 }
  0x10   :  { %72 = vmatpush.msra.mxu0 %v40_v10 }
  0x74   :  { %v30_v16 = vpop.permute.xlu0 %29 }
  0x75   :  { %vm34_vm1 = vcmp.eq.s32.totalorder %v27_v15, %v30_v16 }
  0x76   :  { %v1713_v18 = vsel %vm34_vm1, 1.0, %v1994_v17 }
  0x77   :  { %1715 = vmatmul.msk.f32.vlgmr.msra.gmra.mxu0 %vm50_vm0, %v1713_v18 }
  0x7c   :  { %v33_v19 = vpop.permute.xlu0 %32 }
  0x7d   :  { %vm35_vm2 = vcmp.eq.s32.totalorder %v27_v15, %v33_v19 }
  0x7e   :  { %v1714_v20 = vsel %vm35_vm2, 1.0, %v1994_v17 }
  0x7f   :  { %1716 = vmatmul.msk.f32.gmra.mxu0 %vm50_vm0, %v1714_v20 }
  0xf4   :  { %v74_v25 = vpop.f32.mrf.mxu0 }
  0xf5   :  { %v2110_v26 = vadd.f32 %v74_v25, %v48_v24 }
  0xf7   :  { %1717 = vmatmul.msk.f32.vlgmr.msra.gmra.mxu1 %vm119_vm3, %v2110_v26 }
  0xfc   :  { %v77_v28 = vpop.f32.mrf.mxu0 }
  0xfd   :  { %v2117_v29 = vadd.f32 %v77_v28, %v49_v27 }
  0xff   :  { %1718 = vmatmul.msk.f32.gmra.mxu1 %vm119_vm3, %v2117_v29 }
 0x174   :  { %v2121_v30 = vpop.f32.mrf.mxu1 }
 0x175   :  { %190 = vrot.lane.b32.xlu2 %v2121_v30, %s1995_s28  ;;  %268 = vrot.lane.b32.xlu0 %v2121_v30, %s1996_s29 }
 0x17c   :  { %v2127_v31 = vpop.f32.mrf.mxu1 }
 0x17d   :  { %186 = vrot.lane.b32.xlu0 %v2121_v30, %s1997_s30  ;;  %270 = vrot.lane.b32.xlu2 %v2127_v31, %s1996_s29  ;;  %v1825_v10 = vpack.i.bf16 %v2121_v30, %v2127_v31 }
 0x17e   :  { %153 = vrot.lane.b32.xlu1 %v2127_v31, %s1998_s2 }
 0x185   :  { %266 = vrot.lane.b32.xlu0 %v2127_v31, %s1999_s7  ;;  %192 = vrot.lane.b32.xlu2 %v2127_v31, %s1995_s28 }
 0x186   :  { %151 = vrot.lane.b32.xlu1 %v2121_v30, %s1998_s2 }
 0x18d   :  { %227 = vrot.lane.b32.xlu0 %v2127_v31, %s2000_s8  ;;  %229 = vrot.lane.b32.xlu2 %v2121_v30, %s2001_s9 }
 0x18e   :  { %264 = vrot.lane.b32.xlu1 %v2121_v30, %s1999_s7 }
 0x195   :  { %188 = vrot.lane.b32.xlu2 %v2127_v31, %s1997_s30 }
 0x196   :  { %231 = vrot.lane.b32.xlu1 %v2127_v31, %s2001_s9 }
 0x19e   :  { %225 = vrot.lane.b32.xlu1 %v2121_v30, %s2000_s8 }
 0x1a6   :  { %89 = vrot.lane.b32.xlu1 %v87_v38, %s2003_s12 }
 0x1cf   :  { %v191_v32 = vpop.permute.xlu2 %190 }
 0x1d7   :  { %v271_v33 = vpop.permute.xlu2 %270 }
 0x1d8   :  { %1731 = vmatpush.xpose.msk.msra.mxu2 %vm84_vm4, %v271_v33 }
 0x1df   :  { %v193_v40 = vpop.permute.xlu2 %192 }
 0x1e7   :  { %v269_v34 = vpop.permute.xlu0 %268  ;;  %v230_v45 = vpop.permute.xlu2 %229 }
 0x1e8   :  { %1732 = vmatpush.xpose.msk.msra.mxu2 %vm84_vm4, %v269_v34 }
 0x1ef   :  { %v187_v41 = vpop.permute.xlu0 %186  ;;  %v189_v47 = vpop.permute.xlu2 %188 }
 0x1f0   :  { %v154_v35 = vpop.permute.xlu1 %153 }
 0x1f1   :  { %1719 = vmatpush.xpose.msk.msra.mxu3 %vm84_vm4, %v154_v35 }
 0x1f7   :  { %v267_v43 = vpop.permute.xlu0 %266 }
 0x1f8   :  { %v152_v39 = vpop.permute.xlu1 %151 }
 0x1f9   :  { %1720 = vmatpush.xpose.msk.msra.mxu3 %vm84_vm4, %v152_v39 }
 0x1fc   :  { %1721 = vmatmul.msk.f32.vlgmr.msra.gmra.mxu3 %vm84_vm4, %v2121_v30 }
 0x1fd   :  { %1723 = vmatpush.xpose.msk.msrb.mxu3 %vm84_vm4, %v193_v40 }
 0x1ff   :  { %v228_v48 = vpop.permute.xlu0 %227 }
 0x200   :  { %v265_v42 = vpop.permute.xlu1 %264 }
 0x201   :  { %1724 = vmatpush.xpose.msk.msrb.mxu3 %vm84_vm4, %v191_v32  ;;  %1733 = vmatmul.msk.f32.vlgmr.msra.gmra.mxu2 %vm84_vm4, %v265_v42 }
 0x204   :  { %1722 = vmatmul.msk.f32.gmra.mxu3 %vm84_vm4, %v2127_v31 }
 0x208   :  { %v232_v44 = vpop.permute.xlu1 %231 }
 0x209   :  { %1727 = vmatpush.xpose.msk.msrb.mxu1 %vm84_vm4, %v232_v44  ;;  %1734 = vmatmul.msk.f32.gmra.mxu2 %vm84_vm4, %v267_v43 }
 0x20c   :  { %1725 = vmatmul.msk.f32.vlgmr.msrb.gmra.mxu3 %vm84_vm4, %v187_v41 }
 0x20d   :  { %1728 = vmatpush.xpose.msk.msrb.mxu1 %vm84_vm4, %v230_v45 }
 0x210   :  { %v226_v46 = vpop.permute.xlu1 %225 }
 0x211   :  { %1729 = vmatmul.msk.f32.vlgmr.msrb.gmra.mxu1 %vm84_vm4, %v226_v46 }
 0x214   :  { %1726 = vmatmul.msk.f32.gmra.mxu3 %vm84_vm4, %v189_v47 }
 0x218   :  { %v90_v57 = vpop.permute.xlu1 %89 }
 0x219   :  { %1730 = vmatmul.msk.f32.gmra.mxu1 %vm84_vm4, %v228_v48  ;;  %v2184_v58 = vsel %vm84_vm4, -1e+20, %v90_v57 }
 0x27f   :  { %v180_v50 = vpop.f32.mrf.mxu3 }
 0x280   :  { %v2203_v14 = vadd.f32 %v180_v50, %v2179_v52 }
 0x282   :  { %v312_v15 = vsel %vm311_vm7, %v2203_v14, -inf }
 0x284   :  { %v297_v53 = vpop.f32.mrf.mxu2 }
 0x285   :  { %v309_v54 = vadd.f32 %v297_v53, %v2179_v52 }
 0x287   :  { %v183_v55 = vpop.f32.mrf.mxu3  ;;  %v330_v56 = vsel %vm311_vm7, %v309_v54, -inf }
 0x288   :  { %331 = vmax.xlane.f32.xlu2 %v330_v56  ;;  %v2208_v16 = vadd.f32 %v183_v55, %v2184_v58 }
 0x28a   :  { %v315_v17 = vsel %vm311_vm7, %v2208_v16, -inf }
 0x28c   :  { %v300_v59 = vpop.f32.mrf.mxu2 }
 0x28d   :  { %v310_v60 = vadd.f32 %v300_v59, %v2184_v58 }
 0x28e   :  { %v258_v61 = vpop.f32.mrf.mxu1 }
 0x28f   :  { %v307_v62 = vadd.f32 %v258_v61, %v2179_v52  ;;  %v219_v63 = vpop.f32.mrf.mxu3  ;;  %v333_v0 = vsel %vm311_vm7, %v310_v60, -inf }
 0x290   :  { %v305_v1 = vadd.f32 %v219_v63, %v2179_v52  ;;  %334 = vmax.xlane.f32.xlu2 %v333_v0 }
 0x291   :  { %v324_v2 = vsel %vm311_vm7, %v307_v62, -inf }
 0x292   :  { %325 = vmax.xlane.f32.xlu1 %v324_v2  ;;  %v318_v3 = vsel %vm311_vm7, %v305_v1, -inf }
 0x293   :  { %319 = vmax.xlane.f32.xlu0 %v318_v3 }
 0x296   :  { %v261_v4 = vpop.f32.mrf.mxu1 }
 0x297   :  { %v308_v5 = vadd.f32 %v261_v4, %v2184_v58  ;;  %v222_v6 = vpop.f32.mrf.mxu3 }
 0x298   :  { %v306_v7 = vadd.f32 %v222_v6, %v2184_v58 }
 0x299   :  { %v327_v8 = vsel %vm311_vm7, %v308_v5, -inf }
 0x29a   :  { %328 = vmax.xlane.f32.xlu1 %v327_v8  ;;  %v321_v9 = vsel %vm311_vm7, %v306_v7, -inf }
 0x29b   :  { %322 = vmax.xlane.f32.xlu0 %v321_v9 }
 0x2a8   :  { %1826 = vrot.lane.b32.xlu2 %v1825_v10, %s2004_s1 }
 0x2af   :  { %1831 = vrot.lane.b32.xlu0 %v1825_v10, %s2005_s15 }
 0x2b3   :  { %1836 = vrot.lane.b32.xlu1 %v1825_v10, %s2006_s16 }
 0x2bb   :  { %1841 = vrot.lane.b32.xlu1 %v1825_v10, %s2007_s17 }
 0x2d1   :  { %313 = vmax.xlane.f32.xlu2 %v312_v15 }
 0x2d9   :  { %316 = vmax.xlane.f32.xlu0 %v315_v17 }
 0x2fb   :  { %v332_v18 = vpop.xlane.xlu2 %331 }
 0x2fc   :  { %v342_v19 = vsub.f32 %v309_v54, %v332_v18 }
 0x2fe   :  { %v356_v20 = vmul.f32 1.442695, %v342_v19 }
 0x300   :  { %1885 = vpow2.f32 %v356_v20 }
 0x303   :  { %v335_v24 = vpop.xlane.xlu2 %334 }
 0x304   :  { %v343_v34 = vsub.f32 %v310_v60, %v335_v24 }
 0x305   :  { %v326_v25 = vpop.xlane.xlu1 %325 }
 0x306   :  { %v1886_v27 = vpop.eup %1885  ;;  %v340_v28 = vsub.f32 %v307_v62, %v326_v25  ;;  %v320_v30 = vpop.xlane.xlu0 %319  ;;  %v358_v38 = vmul.f32 1.442695, %v343_v34 }
 0x307   :  { %v338_v31 = vsub.f32 %v305_v1, %v320_v30  ;;  %v378_v32 = vsel %vm311_vm7, %v1886_v27, 0.0 }
 0x308   :  { %v352_v33 = vmul.f32 1.442695, %v340_v28  ;;  %379 = vadd.xlane.f32.xlu0 %v378_v32 }
 0x309   :  { %v348_v35 = vmul.f32 1.442695, %v338_v31 }
 0x30a   :  { %1887 = vpow2.f32 %v352_v33 }
 0x30b   :  { %1889 = vpow2.f32 %v348_v35  ;;  %v1827_v36 = vpop.permute.xlu2 %1826 }
 0x30c   :  { %v1828_v37 = vunpack.i.l.bf16 %v1827_v36  ;;  %v1829_v42 = vunpack.i.h.bf16 %v1827_v36  ;;  %1891 = vpow2.f32 %v358_v38 }
 0x30d   :  { %v329_v39 = vpop.xlane.xlu1 %328 }
 0x30e   :  { %v341_v40 = vsub.f32 %v308_v5, %v329_v39  ;;  %633 = vmatpush.msrb.mxu2 %v1828_v37  ;;  %v323_v41 = vpop.xlane.xlu0 %322 }
 0x30f   :  { %v339_v43 = vsub.f32 %v306_v7, %v323_v41 }
 0x310   :  { %v1888_v44 = vpop.eup %1887  ;;  %v354_v45 = vmul.f32 1.442695, %v341_v40  ;;  %634 = vmatpush.msrb.mxu2 %v1829_v42 }
 0x311   :  { %v1890_v46 = vpop.eup %1889  ;;  %v350_v47 = vmul.f32 1.442695, %v339_v43  ;;  %1741 = vmatmul.msk.f32.vlgmr.msrb.gmra.mxu2 %vm311_vm7, %v1886_v27  ;;  %v372_v48 = vsel %vm311_vm7, %v1888_v44, 0.0 }
 0x312   :  { %1893 = vpow2.f32 %v354_v45  ;;  %373 = vadd.xlane.f32.xlu2 %v372_v48  ;;  %v366_v49 = vsel %vm311_vm7, %v1890_v46, 0.0  ;;  %v1892_v50 = vpop.eup %1891 }
 0x313   :  { %1895 = vpow2.f32 %v350_v47  ;;  %367 = vadd.xlane.f32.xlu1 %v366_v49  ;;  %v381_v57 = vsel %vm311_vm7, %v1892_v50, 0.0 }
 0x318   :  { %v1894_v51 = vpop.eup %1893 }
 0x319   :  { %v1896_v53 = vpop.eup %1895  ;;  %1742 = vmatmul.msk.f32.gmra.mxu2 %vm311_vm7, %v1892_v50  ;;  %v375_v54 = vsel %vm311_vm7, %v1894_v51, 0.0 }
 0x31a   :  { %376 = vadd.xlane.f32.xlu0 %v375_v54  ;;  %v369_v55 = vsel %vm311_vm7, %v1896_v53, 0.0 }
 0x31b   :  { %370 = vadd.xlane.f32.xlu2 %v369_v55 }
 0x321   :  { %v1832_v56 = vpop.permute.xlu0 %1831 }
 0x322   :  { %v1833_v59 = vunpack.i.l.bf16 %v1832_v56  ;;  %v1834_v60 = vunpack.i.h.bf16 %v1832_v56 }
 0x323   :  { %382 = vadd.xlane.f32.xlu2 %v381_v57 }
 0x324   :  { %559 = vmatpush.msrb.mxu0 %v1833_v59 }
 0x325   :  { %v1837_v61 = vpop.permute.xlu1 %1836 }
 0x326   :  { %v1838_v62 = vunpack.i.l.bf16 %v1837_v61  ;;  %560 = vmatpush.msrb.mxu0 %v1834_v60  ;;  %v1839_v63 = vunpack.i.h.bf16 %v1837_v61 }
 0x327   :  { %1737 = vmatmul.msk.f32.vlgmr.msrb.gmra.mxu0 %vm311_vm7, %v1890_v46 }
 0x328   :  { %596 = vmatpush.msra.mxu1 %v1838_v62 }
 0x32a   :  { %597 = vmatpush.msra.mxu1 %v1839_v63 }
 0x32b   :  { %1739 = vmatmul.msk.f32.vlgmr.msra.gmra.mxu1 %vm311_vm7, %v1888_v44 }
 0x32d   :  { %v1842_v0 = vpop.permute.xlu1 %1841 }
 0x32e   :  { %v1843_v1 = vunpack.i.l.bf16 %v1842_v0  ;;  %v1844_v2 = vunpack.i.h.bf16 %v1842_v0 }
 0x32f   :  { %1738 = vmatmul.msk.f32.gmra.mxu0 %vm311_vm7, %v1896_v53 }
 0x330   :  { %522 = vmatpush.msra.mxu3 %v1843_v1 }
 0x332   :  { %523 = vmatpush.msra.mxu3 %v1844_v2 }
 0x333   :  { %1740 = vmatmul.msk.f32.gmra.mxu1 %vm311_vm7, %v1894_v51 }
 0x33b   :  { %1846 = vrot.lane.b32.xlu2 %v1845_v13, %s2008_s0 }
 0x344   :  { %v314_v3 = vpop.xlane.xlu2 %313 }
 0x345   :  { %v336_v4 = vsub.f32 %v2203_v14, %v314_v3 }
 0x347   :  { %v344_v5 = vmul.f32 1.442695, %v336_v4 }
 0x349   :  { %1897 = vpow2.f32 %v344_v5 }
 0x34c   :  { %v317_v6 = vpop.xlane.xlu0 %316 }
 0x34d   :  { %v337_v7 = vsub.f32 %v2208_v16, %v317_v6 }
 0x34f   :  { %v1898_v8 = vpop.eup %1897  ;;  %v346_v9 = vmul.f32 1.442695, %v337_v7 }
 0x350   :  { %1735 = vmatmul.msk.f32.vlgmr.msra.gmra.mxu3 %vm311_vm7, %v1898_v8  ;;  %v360_v10 = vsel %vm311_vm7, %v1898_v8, 0.0 }
 0x351   :  { %1899 = vpow2.f32 %v346_v9  ;;  %361 = vadd.xlane.f32.xlu1 %v360_v10 }
 0x357   :  { %v1900_v15 = vpop.eup %1899 }
 0x358   :  { %1736 = vmatmul.msk.f32.gmra.mxu3 %vm311_vm7, %v1900_v15  ;;  %v363_v11 = vsel %vm311_vm7, %v1900_v15, 0.0 }
 0x359   :  { %364 = vadd.xlane.f32.xlu0 %v363_v11 }
 0x36d   :  { %1851 = vrot.lane.b32.xlu0 %v1850_v23, %s2008_s0 }
 0x37b   :  { %v380_v12 = vpop.xlane.xlu0 %379 }
 0x37c   :  { %1901 = vrcp.f32 %v380_v12  ;;  %v479_v27 = vand.u32 2147483648, %v380_v12  ;;  %vm473_vm9 = vweird.f32 %v380_v12  ;;  %v477_v21 = vand.u32 2147483647, %v380_v12 }
 0x37e   :  { %v480_v31 = vor.u32 1.1754944e-38, %v479_v27  ;;  %vm478_vm11 = vcmp.eq.f32.partialorder %v477_v21, 8.507059e+37 }
 0x382   :  { %v1902_v13 = vpop.eup %1901 }
 0x383   :  { %v469_v14 = vmul.f32 %v1902_v13, %v380_v12  ;;  %vm474_vm8 = vweird.f32 %v1902_v13 }
 0x384   :  { %vm475_vm10 = vmor %vm473_vm9, %vm474_vm8 }
 0x385   :  { %v470_v16 = vsub.f32 1.0, %v469_v14  ;;  %v2238_v17 = vpop.xlane.xlu2 %373 }
 0x386   :  { %v368_v18 = vpop.xlane.xlu1 %367  ;;  %vm445_vm0 = vweird.f32 %v2238_v17  ;;  %v451_v55 = vand.u32 2147483648, %v2238_v17  ;;  %v449_v2 = vand.u32 2147483647, %v2238_v17 }
 0x387   :  { %1903 = vrcp.f32 %v368_v18  ;;  %v471_v19 = vmul.f32 %v1902_v13, %v470_v16  ;;  %v423_v49 = vand.u32 2147483648, %v368_v18  ;;  %vm417_vm13 = vweird.f32 %v368_v18 }
 0x388   :  { %1905 = vrcp.f32 %v2238_v17  ;;  %v421_v50 = vand.u32 2147483647, %v368_v18  ;;  %v452_v15 = vor.u32 1.1754944e-38, %v451_v55 }
 0x389   :  { %v472_v20 = vadd.f32 %v1902_v13, %v471_v19  ;;  %v424_v63 = vor.u32 1.1754944e-38, %v423_v49 }
 0x38a   :  { %vm422_vm5 = vcmp.eq.f32.partialorder %v421_v50, 8.507059e+37 }
 0x38b   :  { %v476_v30 = vsel %vm475_vm10, %v1902_v13, %v472_v20 }
 0x38c   :  { %v481_v33 = vsel %vm478_vm11, %v480_v31, %v476_v30  ;;  %vm450_vm11 = vcmp.eq.f32.partialorder %v449_v2, 8.507059e+37 }
 0x38d   :  { %v1904_v24 = vpop.eup %1903  ;;  %v2246_v28 = vpop.xlane.xlu0 %376 }
 0x38e   :  { %v2241_v25 = vpop.xlane.xlu2 %370  ;;  %v2243_v22 = vpop.eup %1905  ;;  %v413_v23 = vmul.f32 %v1904_v24, %v368_v18  ;;  %vm418_vm12 = vweird.f32 %v1904_v24  ;;  %v465_v21 = vand.u32 2147483648, %v2246_v28 }
 0x38f   :  { %1907 = vrcp.f32 %v2241_v25  ;;  %v441_v32 = vmul.f32 %v2243_v22, %v2238_v17  ;;  %vm446_vm14 = vweird.f32 %v2243_v22  ;;  %vm2263_vm15 = vmor %vm417_vm13, %vm418_vm12  ;;  %v437_v11 = vand.u32 2147483648, %v2241_v25 }
 0x390   :  { %1909 = vrcp.f32 %v2246_v28  ;;  %v414_v35 = vsub.f32 1.0, %v413_v23  ;;  %vm2272_vm2 = vmor %vm445_vm0, %vm446_vm14  ;;  %vm431_vm12 = vweird.f32 %v2241_v25  ;;  %v435_v14 = vand.u32 2147483647, %v2241_v25 }
 0x391   :  { %v442_v39 = vsub.f32 1.0, %v441_v32  ;;  %v438_v27 = vor.u32 1.1754944e-38, %v437_v11  ;;  %vm459_vm0 = vweird.f32 %v2246_v28  ;;  %v466_v32 = vor.u32 1.1754944e-38, %v465_v21 }
 0x392   :  { %v415_v41 = vmul.f32 %v1904_v24, %v414_v35 }
 0x393   :  { %v443_v43 = vmul.f32 %v2243_v22, %v442_v39 }
 0x394   :  { %v636_v34 = vpop.f32.mrf.mxu2  ;;  %v416_v47 = vadd.f32 %v1904_v24, %v415_v41 }
 0x395   :  { %v642_v36 = vmul.f32 %v636_v34, %v481_v33  ;;  %v2251_v37 = vpop.eup %1907  ;;  %v444_v51 = vadd.f32 %v2243_v22, %v443_v43 }
 0x396   :  { %v383_v38 = vpop.xlane.xlu2 %382  ;;  %v427_v40 = vmul.f32 %v2251_v37, %v2241_v25  ;;  %v2256_v42 = vpop.eup %1909  ;;  %v420_v59 = vsel %vm2263_vm15, %v1904_v24, %v416_v47  ;;  %vm432_vm8 = vweird.f32 %v2251_v37  ;;  %vm436_vm15 = vcmp.eq.f32.partialorder %v435_v14, 8.507059e+37 }
 0x397   :  { %1911 = vrcp.f32 %v383_v38  ;;  %662 = vrot.lane.b32.xlu0 %v642_v36, %s2009_s18  ;;  %v455_v45 = vmul.f32 %v2256_v42, %v2246_v28  ;;  %v493_v57 = vand.u32 2147483648, %v383_v38  ;;  %v491_v62 = vand.u32 2147483647, %v383_v38  ;;  %vm433_vm13 = vmor %vm431_vm12, %vm432_vm8 }
 0x398   :  { %v428_v46 = vsub.f32 1.0, %v427_v40  ;;  %v448_v1 = vsel %vm2272_vm2, %v2243_v22, %v444_v51  ;;  %vm487_vm6 = vweird.f32 %v383_v38  ;;  %v425_v4 = vsel %vm422_vm5, %v424_v63, %v420_v59 }
 0x399   :  { %v456_v56 = vsub.f32 1.0, %v455_v45  ;;  %v494_v6 = vor.u32 1.1754944e-38, %v493_v57  ;;  %vm492_vm10 = vcmp.eq.f32.partialorder %v491_v62, 8.507059e+37  ;;  %v453_v17 = vsel %vm450_vm11, %v452_v15, %v448_v1 }
 0x39a   :  { %v429_v60 = vmul.f32 %v2251_v37, %v428_v46  ;;  %vm460_vm14 = vweird.f32 %v2256_v42  ;;  %v463_v25 = vand.u32 2147483647, %v2246_v28 }
 0x39b   :  { %v457_v9 = vmul.f32 %v2256_v42, %v456_v56 }
 0x39c   :  { %v430_v8 = vadd.f32 %v2251_v37, %v429_v60  ;;  %v639_v13 = vpop.f32.mrf.mxu2  ;;  %vm464_vm2 = vcmp.eq.f32.partialorder %v463_v25, 8.507059e+37 }
 0x39d   :  { %v1912_v44 = vpop.eup %1911  ;;  %v458_v24 = vadd.f32 %v2256_v42, %v457_v9 }
 0x39e   :  { %v483_v48 = vmul.f32 %v1912_v44, %v383_v38  ;;  %vm488_vm1 = vweird.f32 %v1912_v44  ;;  %v434_v20 = vsel %vm433_vm13, %v2251_v37, %v430_v8  ;;  %v1847_v36 = vpop.permute.xlu2 %1846  ;;  %vm672_vm13 = vcmask 195584  }
 0x39f   :  { %vm489_vm9 = vmor %vm487_vm6, %vm488_vm1  ;;  %v439_v22 = vsel %vm436_vm15, %v438_v27, %v434_v20  ;;  %v1849_v37 = vunpack.i.h.bf16 %v1847_v36  ;;  %v1848_v38 = vunpack.i.l.bf16 %v1847_v36 }
 0x3a0   :  { %v484_v53 = vsub.f32 1.0, %v483_v48  ;;  %vm461_vm1 = vmor %vm459_vm0, %vm460_vm14 }
 0x3a1   :  { %v462_v31 = vsel %vm461_vm1, %v2256_v42, %v458_v24  ;;  %710 = vmatpush.msrb.mxu3 %v1848_v38 }
 0x3a2   :  { %v485_v61 = vmul.f32 %v1912_v44, %v484_v53  ;;  %v467_v33 = vsel %vm464_vm2, %v466_v32, %v462_v31 }
 0x3a3   :  { %711 = vmatpush.msrb.mxu3 %v1849_v37 }
 0x3a4   :  { %v486_v3 = vadd.f32 %v1912_v44, %v485_v61  ;;  %v562_v5 = vpop.f32.mrf.mxu0 }
 0x3a5   :  { %v568_v7 = vmul.f32 %v562_v5, %v425_v4 }
 0x3a6   :  { %v490_v10 = vsel %vm489_vm9, %v1912_v44, %v486_v3 }
 0x3a7   :  { %v495_v12 = vsel %vm492_vm10, %v494_v6, %v490_v10  ;;  %646 = vrot.lane.b32.xlu1 %v568_v7, %s2003_s12 }
 0x3a8   :  { %v643_v16 = vmul.f32 %v639_v13, %v495_v12  ;;  %v599_v18 = vpop.f32.mrf.mxu1 }
 0x3a9   :  { %v605_v19 = vmul.f32 %v599_v18, %v453_v17  ;;  %v2311_v17 = vld [vmem:[%s2703_s5] sm:$0xff] }
 0x3aa   :  { %664 = vrot.lane.b32.xlu0 %v643_v16, %s2009_s18  ;;  %v675_v18 = vperm.slane %v2311_v17, 0 }
 0x3ab   :  { %654 = vrot.lane.b32.xlu2 %v605_v19, %s2010_s19 }
 0x3ac   :  { %v565_v23 = vpop.f32.mrf.mxu0 }
 0x3ad   :  { %v569_v30 = vmul.f32 %v565_v23, %v439_v22 }
 0x3af   :  { %648 = vrot.lane.b32.xlu1 %v569_v30, %s2003_s12  ;;  %v2011_v30 = vmov 32.0  }
 0x3b0   :  { %v602_v34 = vpop.f32.mrf.mxu1 }
 0x3b1   :  { %v606_v35 = vmul.f32 %v602_v34, %v467_v33 }
 0x3b3   :  { %656 = vrot.lane.b32.xlu2 %v606_v35, %s2010_s19 }
 0x3c4   :  { %v362_v42 = vpop.xlane.xlu1 %361 }
 0x3c5   :  { %1913 = vrcp.f32 %v362_v42  ;;  %v395_v51 = vand.u32 2147483648, %v362_v42  ;;  %vm389_vm6 = vweird.f32 %v362_v42  ;;  %v393_v53 = vand.u32 2147483647, %v362_v42 }
 0x3c7   :  { %v396_v56 = vor.u32 1.1754944e-38, %v395_v51  ;;  %vm394_vm9 = vcmp.eq.f32.partialorder %v393_v53, 8.507059e+37  ;;  %v118_v51 = vld [vmem:[%s2703_s5 + $0x8] sm:$0xff]  ;;  %v116_v53 = vld [vmem:[%s2702_s4 + $0x78] sm:$0xff] }
 0x3c8   :  { %822 = vmatpush.msrb.mxu1 %v116_v53 }
 0x3cb   :  { %v1914_v43 = vpop.eup %1913 }
 0x3cc   :  { %v365_v28 = vpop.xlane.xlu0 %364  ;;  %v385_v44 = vmul.f32 %v1914_v43, %v362_v42  ;;  %vm390_vm5 = vweird.f32 %v1914_v43 }
 0x3cd   :  { %1915 = vrcp.f32 %v365_v28  ;;  %vm391_vm8 = vmor %vm389_vm6, %vm390_vm5  ;;  %v409_v61 = vand.u32 2147483648, %v365_v28  ;;  %vm403_vm11 = vweird.f32 %v365_v28  ;;  %v407_v63 = vand.u32 2147483647, %v365_v28 }
 0x3ce   :  { %v386_v45 = vsub.f32 1.0, %v385_v44  ;;  %1917 = vrcp.f32 %v2011_v30  ;;  %v100_v44 = vld [vmem:[%s2701_s3 + $0x38] sm:$0xff] }
 0x3cf   :  { %v410_v4 = vor.u32 1.1754944e-38, %v409_v61  ;;  %vm408_vm14 = vcmp.eq.f32.partialorder %v407_v63, 8.507059e+37  ;;  %808 = vmatpush.msra.mxu0 %v100_v44  ;;  %v112_v63 = vld [vmem:[%s2702_s4 + $0x58] sm:$0xff] }
 0x3d0   :  { %v387_v48 = vmul.f32 %v1914_v43, %v386_v45  ;;  %v98_v45 = vld [vmem:[%s2701_s3 + $0x28] sm:$0xff] }
 0x3d1   :  { %809 = vmatpush.msra.mxu0 %v98_v45 }
 0x3d2   :  { %v388_v50 = vadd.f32 %v1914_v43, %v387_v48 }
 0x3d3   :  { %v1916_v46 = vpop.eup %1915  ;;  %v525_v59 = vpop.f32.mrf.mxu3 }
 0x3d4   :  { %v399_v47 = vmul.f32 %v1916_v46, %v365_v28  ;;  %v392_v54 = vsel %vm391_vm8, %v1914_v43, %v388_v50  ;;  %vm404_vm10 = vweird.f32 %v1916_v46  ;;  %v1918_v31 = vpop.eup %1917 }
 0x3d5   :  { %v397_v57 = vsel %vm394_vm9, %v396_v56, %v392_v54  ;;  %vm405_vm12 = vmor %vm403_vm11, %vm404_vm10  ;;  %v730_v32 = vmul.f32 32.0, %v1918_v31  ;;  %vm734_vm15 = vweird.f32 %v1918_v31  ;;  %v115_v54 = vld [vmem:[%s2702_s4 + $0x70] sm:$0xff]  ;;  %v114_v56 = vld [vmem:[%s2702_s4 + $0x68] sm:$0xff]  ;;  %vm787_vm9 = vcmask 785408  }
 0x3d6   :  { %v400_v49 = vsub.f32 1.0, %v399_v47  ;;  %v531_v62 = vmul.f32 %v525_v59, %v397_v57  ;;  %v94_v47 = vld [vmem:[%s2701_s3 + $0x8] sm:$0xff]  ;;  %823 = vmatpush.msrb.mxu1 %v115_v54 }
 0x3d7   :  { %v731_v33 = vsub.f32 1.0, %v730_v32 }
 0x3d8   :  { %v401_v55 = vmul.f32 %v1916_v46, %v400_v49  ;;  %824 = vmatpush.msrb.mxu1 %v114_v56 }
 0x3d9   :  { %v732_v34 = vmul.f32 %v1918_v31, %v731_v33  ;;  %v103_v33 = vld [vmem:[%s2702_s4 + $0x10] sm:$0xff] }
 0x3da   :  { %v402_v60 = vadd.f32 %v1916_v46, %v401_v55  ;;  %v780_v55 = vperm.slane %v118_v51, 0 }
 0x3db   :  { %v528_v9 = vpop.f32.mrf.mxu3  ;;  %v733_v35 = vadd.f32 %v1918_v31, %v732_v34  ;;  %v102_v34 = vld [vmem:[%s2702_s4 + $0x8] sm:$0xff] }
 0x3dc   :  { %v406_v2 = vsel %vm405_vm12, %v1916_v46, %v402_v60  ;;  %v96_v46 = vld [vmem:[%s2701_s3 + $0x18] sm:$0xff]  ;;  %v113_v60 = vld [vmem:[%s2702_s4 + $0x60] sm:$0xff] }
 0x3dd   :  { %v411_v8 = vsel %vm408_vm14, %v410_v4, %v406_v2  ;;  %810 = vmatpush.msra.mxu0 %v96_v46  ;;  %825 = vmatpush.msrb.mxu1 %v113_v60 }
 0x3de   :  { %v532_v10 = vmul.f32 %v528_v9, %v411_v8  ;;  %v108_v8 = vld [vmem:[%s2702_s4 + $0x38] sm:$0xff] }
 0x3df   :  { %v1852_v39 = vpop.permute.xlu0 %1851  ;;  %811 = vmatpush.msra.mxu0 %v94_v47  ;;  %826 = vmatpush.msrb.mxu1 %v112_v63 }
 0x3e0   :  { %v1854_v40 = vunpack.i.h.bf16 %v1852_v39  ;;  %v1853_v41 = vunpack.i.l.bf16 %v1852_v39 }
 0x3e2   :  { %712 = vmatpush.msrb.mxu3 %v1853_v41 }
 0x3e4   :  { %713 = vmatpush.msrb.mxu3 %v1854_v40 }
 0x405   :  { %v655_v0 = vpop.permute.xlu2 %654 }
 0x409   :  { %v663_v5 = vpop.permute.xlu0 %662 }
 0x40d   :  { %v657_v11 = vpop.permute.xlu2 %656 }
 0x419   :  { %v647_v1 = vpop.permute.xlu1 %646 }
 0x41a   :  { %v668_v3 = vsel %vm84_vm4, %v531_v62, %v647_v1  ;;  %v111_v1 = vld [vmem:[%s2702_s4 + $0x50] sm:$0xff] }
 0x41b   :  { %v670_v6 = vsel %vm311_vm7, %v668_v3, %v655_v0  ;;  %v110_v3 = vld [vmem:[%s2702_s4 + $0x48] sm:$0xff]  ;;  %827 = vmatpush.msrb.mxu1 %v111_v1  ;;  %v2417_v1 = vld [vmem:[%s2701_s3 + $0x60] sm:$0xff] }
 0x41c   :  { %v673_v7 = vsel %vm672_vm13, %v670_v6, %v663_v5  ;;  %v665_v13 = vpop.permute.xlu0 %664  ;;  %v109_v5 = vld [vmem:[%s2702_s4 + $0x40] sm:$0xff] }
 0x41d   :  { %1743 = vmatmul.msk.f32.vlgmr.msrb.gmra.mxu3 %vm119_vm3, %v673_v7  ;;  %828 = vmatpush.msrb.mxu1 %v110_v3  ;;  %v2429_v3 = vld [vmem:[%s2701_s3 + $0x40] sm:$0xff] }
 0x41f   :  { %829 = vmatpush.msrb.mxu1 %v109_v5 }
 0x421   :  { %v649_v15 = vpop.permute.xlu1 %648  ;;  %830 = vmatpush.msrb.mxu1 %v108_v8 }
 0x422   :  { %v669_v12 = vsel %vm84_vm4, %v532_v10, %v649_v15  ;;  %v774_v15 = vperm.slane %v2311_v17, 1 }
 0x423   :  { %v671_v14 = vsel %vm311_vm7, %v669_v12, %v657_v11  ;;  %v107_v11 = vld [vmem:[%s2702_s4 + $0x30] sm:$0xff] }
 0x424   :  { %v674_v16 = vsel %vm672_vm13, %v671_v14, %v665_v13  ;;  %831 = vmatpush.msrb.mxu1 %v107_v11 }
 0x425   :  { %1744 = vmatmul.msk.f32.gmra.mxu3 %vm119_vm3, %v674_v16  ;;  %v777_v16 = vperm.slane %v2311_v17, 2 }
 0x4a0   :  { %v715_v19 = vpop.f32.mrf.mxu3 }
 0x4a1   :  { %v716_v20 = vadd.f32 %v715_v19, %v675_v18 }
 0x4a3   :  { %v721_v24 = vadd.f32 %v716_v20, %v2110_v26  ;;  %v2319_v26 = vsel %vm734_vm15, %v1918_v31, %v733_v35  ;;  %v101_v35 = vld [vmem:[%s2702_s4] sm:$0xff] }
 0x4a5   :  { %v723_v27 = vsel %vm119_vm3, %v721_v24, 0.0 }
 0x4a6   :  { %724 = vadd.xlane.f32.xlu1 %v723_v27 }
 0x4a8   :  { %v718_v21 = vpop.f32.mrf.mxu3 }
 0x4a9   :  { %v719_v25 = vadd.f32 %v718_v21, %v675_v18 }
 0x4ab   :  { %v722_v22 = vadd.f32 %v719_v25, %v2117_v29  ;;  %v104_v25 = vld [vmem:[%s2702_s4 + $0x18] sm:$0xff] }
 0x4ad   :  { %v726_v23 = vsel %vm119_vm3, %v722_v22, 0.0 }
 0x4ae   :  { %727 = vadd.xlane.f32.xlu2 %v726_v23 }
 0x4c6   :  { %783 = vrot.lane.b32.xlu2 %v675_v18, %s1998_s2  ;;  %v106_v18 = vld [vmem:[%s2702_s4 + $0x28] sm:$0xff] }
 0x4c7   :  { %832 = vmatpush.msrb.mxu1 %v106_v18 }
 0x519   :  { %v725_v36 = vpop.xlane.xlu1 %724 }
 0x51a   :  { %v736_v37 = vmul.f32 %v2319_v26, %v725_v36 }
 0x51c   :  { %v738_v38 = vsub.f32 %v721_v24, %v736_v37  ;;  %v105_v24 = vld [vmem:[%s2702_s4 + $0x20] sm:$0xff] }
 0x51d   :  { %833 = vmatpush.msrb.mxu1 %v105_v24  ;;  %v891_v24 = vperm.slane %v2311_v17, 4 }
 0x51e   :  { %v740_v29 = vmul.f32 %v738_v38, %v738_v38 }
 0x51f   :  { %834 = vmatpush.msrb.mxu1 %v104_v25 }
 0x520   :  { %v742_v28 = vsel %vm119_vm3, %v740_v29, 0.0 }
 0x521   :  { %v728_v39 = vpop.xlane.xlu2 %727  ;;  %743 = vadd.xlane.f32.xlu0 %v742_v28  ;;  %835 = vmatpush.msrb.mxu1 %v103_v33 }
 0x522   :  { %v737_v40 = vmul.f32 %v2319_v26, %v728_v39 }
 0x523   :  { %836 = vmatpush.msrb.mxu1 %v102_v34 }
 0x524   :  { %v2324_v41 = vsub.f32 %v722_v22, %v737_v40 }
 0x525   :  { %837 = vmatpush.msrb.mxu1 %v101_v35 }
 0x526   :  { %v741_v42 = vmul.f32 %v2324_v41, %v2324_v41 }
 0x528   :  { %v745_v43 = vsel %vm119_vm3, %v741_v42, 0.0 }
 0x529   :  { %746 = vadd.xlane.f32.xlu1 %v745_v43  ;;  %v784_v36 = vpop.permute.xlu2 %783  ;;  %v821_v43 = vperm.slane %v2311_v17, 3 }
 0x535   :  { %785 = vrot.lane.b32.xlu0 %v780_v55, %s1998_s2 }
 0x594   :  { %v744_v48 = vpop.xlane.xlu0 %743 }
 0x595   :  { %v748_v49 = vmul.f32 %v744_v48, %v2319_v26 }
 0x597   :  { %v750_v50 = vadd.f32 1e-05, %v748_v49 }
 0x599   :  { %1919 = vrsqrt.f32 %v750_v50  ;;  %vm758_vm1 = vweird.f32 %v750_v50 }
 0x59c   :  { %v747_v57 = vpop.xlane.xlu1 %746 }
 0x59d   :  { %v749_v59 = vmul.f32 %v747_v57, %v2319_v26 }
 0x59f   :  { %v1920_v61 = vpop.eup %1919  ;;  %v751_v62 = vadd.f32 1e-05, %v749_v59 }
 0x5a0   :  { %v753_v0 = vmul.f32 %v1920_v61, %v750_v50  ;;  %vm759_vm0 = vweird.f32 %v1920_v61 }
 0x5a1   :  { %1921 = vrsqrt.f32 %v751_v62  ;;  %vm760_vm2 = vmor %vm758_vm1, %vm759_vm0  ;;  %vm768_vm6 = vweird.f32 %v751_v62 }
 0x5a2   :  { %v754_v2 = vmul.f32 %v1920_v61, %v753_v0  ;;  %v2411_v0 = vld [vmem:[%s2701_s3 + $0x70] sm:$0xff] }
 0x5a3   :  { %944 = vmatpush.msra.mxu2 %v2411_v0 }
 0x5a4   :  { %v755_v4 = vmul.f32 0.5, %v754_v2  ;;  %v2423_v2 = vld [vmem:[%s2701_s3 + $0x50] sm:$0xff] }
 0x5a5   :  { %945 = vmatpush.msra.mxu2 %v2417_v1  ;;  %v1880_v5 = vpack.i.bf16 %v2429_v3, %v2423_v2 }
 0x5a6   :  { %v756_v6 = vsub.f32 1.5, %v755_v4  ;;  %v1875_v4 = vpack.i.bf16 %v2417_v1, %v2411_v0 }
 0x5a7   :  { %v1922_v7 = vpop.eup %1921  ;;  %v786_v37 = vpop.permute.xlu0 %785  ;;  %946 = vmatpush.msra.mxu2 %v2423_v2 }
 0x5a8   :  { %v757_v9 = vmul.f32 %v1920_v61, %v756_v6  ;;  %v763_v10 = vmul.f32 %v1922_v7, %v751_v62  ;;  %vm769_vm5 = vweird.f32 %v1922_v7 }
 0x5a9   :  { %vm770_vm8 = vmor %vm768_vm6, %vm769_vm5  ;;  %947 = vmatpush.msra.mxu2 %v2429_v3 }
 0x5aa   :  { %v761_v12 = vsel %vm760_vm2, %v1920_v61, %v757_v9  ;;  %v764_v13 = vmul.f32 %v1922_v7, %v763_v10 }
 0x5ab   :  { %v772_v14 = vmul.f32 %v761_v12, %v738_v38  ;;  %v788_v38 = vsel %vm787_vm9, %v784_v36, %v786_v37 }
 0x5ac   :  { %v765_v19 = vmul.f32 0.5, %v764_v13 }
 0x5ad   :  { %v775_v20 = vmul.f32 %v774_v15, %v772_v14 }
 0x5ae   :  { %v766_v27 = vsub.f32 1.5, %v765_v19 }
 0x5af   :  { %v778_v21 = vadd.f32 %v777_v16, %v775_v20 }
 0x5b0   :  { %v767_v22 = vmul.f32 %v1922_v7, %v766_v27 }
 0x5b1   :  { %1745 = vmatmul.msk.f32.vlgmr.msra.gmra.mxu0 %vm119_vm3, %v778_v21 }
 0x5b2   :  { %v771_v23 = vsel %vm770_vm8, %v1922_v7, %v767_v22  ;;  %v894_v22 = vperm.slane %v2311_v17, 5 }
 0x5b3   :  { %v773_v30 = vmul.f32 %v771_v23, %v2324_v41 }
 0x5b5   :  { %v776_v31 = vmul.f32 %v774_v15, %v773_v30 }
 0x5b7   :  { %v779_v32 = vadd.f32 %v777_v16, %v776_v31 }
 0x5b9   :  { %1746 = vmatmul.msk.f32.gmra.mxu0 %vm119_vm3, %v779_v32 }
 0x62e   :  { %v813_v29 = vpop.f32.mrf.mxu0 }
 0x62f   :  { %v814_v28 = vadd.f32 %v813_v29, %v788_v38 }
 0x631   :  { %v819_v39 = vmax.f32 %v814_v28, 0.0 }
 0x633   :  { %838 = vmatmul.f32.vlgmr.msrb.gmra.mxu1 %v819_v39 }
 0x636   :  { %v816_v40 = vpop.f32.mrf.mxu0 }
 0x637   :  { %v817_v41 = vadd.f32 %v816_v40, %v788_v38 }
 0x639   :  { %v820_v42 = vmax.f32 %v817_v41, 0.0 }
 0x63b   :  { %841 = vmatmul.f32.gmra.mxu1 %v820_v42 }
 0x6b0   :  { %v839_v44 = vpop.f32.mrf.mxu1 }
 0x6b1   :  { %v840_v45 = vadd.f32 %v839_v44, %v821_v43 }
 0x6b3   :  { %v845_v46 = vadd.f32 %v840_v45, %v778_v21 }
 0x6b5   :  { %v847_v47 = vsel %vm119_vm3, %v845_v46, 0.0 }
 0x6b6   :  { %848 = vadd.xlane.f32.xlu1 %v847_v47 }
 0x6b8   :  { %v842_v48 = vpop.f32.mrf.mxu1 }
 0x6b9   :  { %v843_v49 = vadd.f32 %v842_v48, %v821_v43 }
 0x6bb   :  { %v846_v50 = vadd.f32 %v843_v49, %v779_v32 }
 0x6bd   :  { %v850_v51 = vsel %vm119_vm3, %v846_v50, 0.0 }
 0x6be   :  { %851 = vadd.xlane.f32.xlu1 %v850_v51 }
 0x729   :  { %v849_v53 = vpop.xlane.xlu1 %848 }
 0x72a   :  { %v853_v54 = vmul.f32 %v849_v53, %v2319_v26 }
 0x72c   :  { %v855_v55 = vsub.f32 %v845_v46, %v853_v54 }
 0x72e   :  { %v857_v56 = vmul.f32 %v855_v55, %v855_v55 }
 0x730   :  { %v859_v57 = vsel %vm119_vm3, %v857_v56, 0.0 }
 0x731   :  { %860 = vadd.xlane.f32.xlu1 %v859_v57  ;;  %v852_v59 = vpop.xlane.xlu1 %851 }
 0x732   :  { %v854_v60 = vmul.f32 %v852_v59, %v2319_v26 }
 0x734   :  { %v856_v61 = vsub.f32 %v846_v50, %v854_v60 }
 0x736   :  { %v858_v62 = vmul.f32 %v856_v61, %v856_v61 }
 0x738   :  { %v862_v63 = vsel %vm119_vm3, %v858_v62, 0.0 }
 0x739   :  { %863 = vadd.xlane.f32.xlu0 %v862_v63 }
 0x7a4   :  { %v861_v6 = vpop.xlane.xlu1 %860 }
 0x7a5   :  { %v865_v7 = vmul.f32 %v861_v6, %v2319_v26 }
 0x7a7   :  { %v867_v8 = vadd.f32 1e-05, %v865_v7 }
 0x7a9   :  { %1923 = vrsqrt.f32 %v867_v8  ;;  %vm875_vm11 = vweird.f32 %v867_v8 }
 0x7ac   :  { %v864_v9 = vpop.xlane.xlu0 %863 }
 0x7ad   :  { %v866_v10 = vmul.f32 %v864_v9, %v2319_v26 }
 0x7af   :  { %v1924_v15 = vpop.eup %1923  ;;  %v868_v11 = vadd.f32 1e-05, %v866_v10 }
 0x7b0   :  { %v870_v12 = vmul.f32 %v1924_v15, %v867_v8  ;;  %vm876_vm10 = vweird.f32 %v1924_v15 }
 0x7b1   :  { %1925 = vrsqrt.f32 %v868_v11  ;;  %vm877_vm12 = vmor %vm875_vm11, %vm876_vm10  ;;  %vm885_vm15 = vweird.f32 %v868_v11 }
 0x7b2   :  { %v871_v13 = vmul.f32 %v1924_v15, %v870_v12 }
 0x7b4   :  { %v872_v14 = vmul.f32 0.5, %v871_v13 }
 0x7b6   :  { %v873_v16 = vsub.f32 1.5, %v872_v14 }
 0x7b7   :  { %v1926_v18 = vpop.eup %1925 }
 0x7b8   :  { %v874_v19 = vmul.f32 %v1924_v15, %v873_v16  ;;  %v880_v20 = vmul.f32 %v1926_v18, %v868_v11  ;;  %vm886_vm14 = vweird.f32 %v1926_v18 }
 0x7b9   :  { %vm887_vm0 = vmor %vm885_vm15, %vm886_vm14 }
 0x7ba   :  { %v878_v27 = vsel %vm877_vm12, %v1924_v15, %v874_v19  ;;  %v881_v21 = vmul.f32 %v1926_v18, %v880_v20 }
 0x7bb   :  { %v889_v25 = vmul.f32 %v878_v27, %v855_v55 }
 0x7bc   :  { %v882_v23 = vmul.f32 0.5, %v881_v21 }
 0x7bd   :  { %v892_v30 = vmul.f32 %v891_v24, %v889_v25 }
 0x7be   :  { %v883_v31 = vsub.f32 1.5, %v882_v23 }
 0x7bf   :  { %v2440_v32 = vadd.f32 %v894_v22, %v892_v30 }
 0x7c0   :  { %v884_v33 = vmul.f32 %v1926_v18, %v883_v31 }
 0x7c1   :  { %1773 = vmatmul.msk.f32.vlgmr.msra.gmra.mxu2 %vm119_vm3, %v2440_v32 }
 0x7c2   :  { %v888_v34 = vsel %vm887_vm0, %v1926_v18, %v884_v33 }
 0x7c3   :  { %v890_v35 = vmul.f32 %v888_v34, %v856_v61 }
 0x7c5   :  { %v893_v36 = vmul.f32 %v891_v24, %v890_v35 }
 0x7c7   :  { %v2444_v37 = vadd.f32 %v894_v22, %v893_v36 }
 0x7c9   :  { %1774 = vmatmul.msk.f32.gmra.mxu2 %vm119_vm3, %v2444_v37 }
 0x844   :  { %v2448_v17 = vpop.f32.mrf.mxu2 }
 0x845   :  { %996 = vrot.lane.b32.xlu0 %v2448_v17, %s1995_s28  ;;  %1035 = vrot.lane.b32.xlu2 %v2448_v17, %s2001_s9 }
 0x846   :  { %957 = vrot.lane.b32.xlu1 %v2448_v17, %s1998_s2 }
 0x84c   :  { %v2460_v38 = vpop.f32.mrf.mxu2 }
 0x84d   :  { %1031 = vrot.lane.b32.xlu2 %v2448_v17, %s2000_s8  ;;  %v1860_v12 = vpack.i.bf16 %v2448_v17, %v2460_v38 }
 0x84e   :  { %1074 = vrot.lane.b32.xlu1 %v2448_v17, %s1996_s29 }
 0x855   :  { %959 = vrot.lane.b32.xlu2 %v2460_v38, %s1998_s2 }
 0x856   :  { %1070 = vrot.lane.b32.xlu1 %v2448_v17, %s1999_s7 }
 0x85d   :  { %1037 = vrot.lane.b32.xlu2 %v2460_v38, %s2001_s9 }
 0x85e   :  { %1033 = vrot.lane.b32.xlu1 %v2460_v38, %s2000_s8 }
 0x865   :  { %1076 = vrot.lane.b32.xlu2 %v2460_v38, %s1996_s29 }
 0x866   :  { %992 = vrot.lane.b32.xlu1 %v2448_v17, %s1997_s30 }
 0x86d   :  { %998 = vrot.lane.b32.xlu2 %v2460_v38, %s1995_s28 }
 0x875   :  { %1072 = vrot.lane.b32.xlu2 %v2460_v38, %s1999_s7 }
 0x87d   :  { %994 = vrot.lane.b32.xlu2 %v2460_v38, %s1997_s30 }
 0x89f   :  { %v1036_v29 = vpop.permute.xlu2 %1035 }
 0x8a7   :  { %v1032_v28 = vpop.permute.xlu2 %1031 }
 0x8af   :  { %v960_v39 = vpop.permute.xlu2 %959 }
 0x8b0   :  { %1775 = vmatpush.xpose.msk.msra.mxu3 %vm84_vm4, %v960_v39 }
 0x8b7   :  { %v1038_v40 = vpop.permute.xlu2 %1037  ;;  %v997_v46 = vpop.permute.xlu0 %996 }
 0x8b8   :  { %v958_v41 = vpop.permute.xlu1 %957  ;;  %1783 = vmatpush.xpose.msk.msrb.mxu2 %vm84_vm4, %v1038_v40 }
 0x8b9   :  { %1776 = vmatpush.xpose.msk.msra.mxu3 %vm84_vm4, %v958_v41 }
 0x8bc   :  { %1777 = vmatmul.msk.f32.vlgmr.msra.gmra.mxu3 %vm84_vm4, %v2448_v17  ;;  %1784 = vmatpush.xpose.msk.msrb.mxu2 %vm84_vm4, %v1036_v29 }
 0x8bf   :  { %1785 = vmatmul.msk.f32.vlgmr.msrb.gmra.mxu2 %vm84_vm4, %v1032_v28  ;;  %v1077_v42 = vpop.permute.xlu2 %1076 }
 0x8c0   :  { %v1075_v43 = vpop.permute.xlu1 %1074  ;;  %1787 = vmatpush.xpose.msk.msrb.mxu3 %vm84_vm4, %v1077_v42 }
 0x8c4   :  { %1778 = vmatmul.msk.f32.gmra.mxu3 %vm84_vm4, %v2460_v38 }
 0x8c5   :  { %1788 = vmatpush.xpose.msk.msrb.mxu3 %vm84_vm4, %v1075_v43 }
 0x8c7   :  { %v999_v44 = vpop.permute.xlu2 %998 }
 0x8c8   :  { %v1071_v45 = vpop.permute.xlu1 %1070  ;;  %1779 = vmatpush.xpose.msk.msrb.mxu0 %vm84_vm4, %v999_v44 }
 0x8cc   :  { %1789 = vmatmul.msk.f32.vlgmr.msrb.gmra.mxu3 %vm84_vm4, %v1071_v45  ;;  %1780 = vmatpush.xpose.msk.msrb.mxu0 %vm84_vm4, %v997_v46 }
 0x8cf   :  { %v1073_v48 = vpop.permute.xlu2 %1072 }
 0x8d0   :  { %v1034_v47 = vpop.permute.xlu1 %1033 }
 0x8d1   :  { %1786 = vmatmul.msk.f32.gmra.mxu2 %vm84_vm4, %v1034_v47 }
 0x8d4   :  { %1790 = vmatmul.msk.f32.gmra.mxu3 %vm84_vm4, %v1073_v48 }
 0x8d7   :  { %v995_v50 = vpop.permute.xlu2 %994 }
 0x8d8   :  { %v993_v49 = vpop.permute.xlu1 %992 }
 0x8d9   :  { %1781 = vmatmul.msk.f32.vlgmr.msrb.gmra.mxu0 %vm84_vm4, %v993_v49 }
 0x8e1   :  { %1782 = vmatmul.msk.f32.gmra.mxu0 %vm84_vm4, %v995_v50 }
 0x93f   :  { %v986_v55 = vpop.f32.mrf.mxu3 }
 0x940   :  { %v2522_v19 = vadd.f32 %v986_v55, %v2179_v52 }
 0x942   :  { %v1064_v51 = vpop.f32.mrf.mxu2  ;;  %v1117_v20 = vsel %vm311_vm7, %v2522_v19, -inf }
 0x943   :  { %v1113_v53 = vadd.f32 %v1064_v51, %v2179_v52 }
 0x945   :  { %v1129_v54 = vsel %vm311_vm7, %v1113_v53, -inf }
 0x946   :  { %1130 = vmax.xlane.f32.xlu0 %v1129_v54 }
 0x947   :  { %v989_v59 = vpop.f32.mrf.mxu3 }
 0x948   :  { %v2516_v16 = vadd.f32 %v989_v59, %v2184_v58 }
 0x94a   :  { %v1120_v18 = vsel %vm311_vm7, %v2516_v16, -inf }
 0x94f   :  { %v1103_v8 = vpop.f32.mrf.mxu3 }
 0x950   :  { %v1115_v10 = vadd.f32 %v1103_v8, %v2179_v52 }
 0x952   :  { %v1135_v15 = vsel %vm311_vm7, %v1115_v10, -inf }
 0x954   :  { %v1067_v56 = vpop.f32.mrf.mxu2 }
 0x955   :  { %v1114_v57 = vadd.f32 %v1067_v56, %v2184_v58 }
 0x956   :  { %v1025_v60 = vpop.f32.mrf.mxu0 }
 0x957   :  { %v1111_v61 = vadd.f32 %v1025_v60, %v2179_v52  ;;  %v1132_v62 = vsel %vm311_vm7, %v1114_v57, -inf  ;;  %v1106_v11 = vpop.f32.mrf.mxu3 }
 0x958   :  { %1133 = vmax.xlane.f32.xlu0 %v1132_v62  ;;  %v1116_v13 = vadd.f32 %v1106_v11, %v2184_v58 }
 0x959   :  { %v1123_v63 = vsel %vm311_vm7, %v1111_v61, -inf }
 0x95a   :  { %1124 = vmax.xlane.f32.xlu2 %v1123_v63  ;;  %v1138_v14 = vsel %vm311_vm7, %v1116_v13, -inf }
 0x95e   :  { %v1028_v6 = vpop.f32.mrf.mxu0 }
 0x95f   :  { %v1112_v7 = vadd.f32 %v1028_v6, %v2184_v58 }
 0x961   :  { %v1126_v9 = vsel %vm311_vm7, %v1112_v7, -inf }
 0x962   :  { %1127 = vmax.xlane.f32.xlu1 %v1126_v9 }
 0x96a   :  { %1136 = vmax.xlane.f32.xlu1 %v1135_v15 }
 0x96c   :  { %1861 = vrot.lane.b32.xlu0 %v1860_v12, %s2004_s1 }
 0x972   :  { %1856 = vrot.lane.b32.xlu2 %v1860_v12, %s2006_s16  ;;  %1139 = vmax.xlane.f32.xlu1 %v1138_v14 }
 0x98b   :  { %1866 = vrot.lane.b32.xlu1 %v1860_v12, %s2005_s15 }
 0x993   :  { %1871 = vrot.lane.b32.xlu1 %v1860_v12, %s2007_s17 }
 0x996   :  { %1121 = vmax.xlane.f32.xlu0 %v1120_v18 }
 0x99b   :  { %1118 = vmax.xlane.f32.xlu2 %v1117_v20 }
 0x9b9   :  { %v1131_v24 = vpop.xlane.xlu0 %1130 }
 0x9ba   :  { %v1145_v27 = vsub.f32 %v1113_v53, %v1131_v24 }
 0x9bc   :  { %v1157_v21 = vmul.f32 1.442695, %v1145_v27 }
 0x9be   :  { %1927 = vpow2.f32 %v1157_v21 }
 0x9c4   :  { %v1928_v25 = vpop.eup %1927 }
 0x9c5   :  { %v1177_v58 = vsel %vm311_vm7, %v1928_v25, 0.0 }
 0x9c6   :  { %1178 = vadd.xlane.f32.xlu2 %v1177_v58 }
 0x9cb   :  { %v1134_v22 = vpop.xlane.xlu0 %1133 }
 0x9cc   :  { %v1146_v23 = vsub.f32 %v1114_v57, %v1134_v22 }
 0x9cd   :  { %v1125_v30 = vpop.xlane.xlu2 %1124 }
 0x9ce   :  { %v1159_v31 = vmul.f32 1.442695, %v1146_v23  ;;  %v1143_v33 = vsub.f32 %v1111_v61, %v1125_v30 }
 0x9d0   :  { %1929 = vpow2.f32 %v1159_v31  ;;  %v1153_v52 = vmul.f32 1.442695, %v1143_v33 }
 0x9d2   :  { %1931 = vpow2.f32 %v1153_v52 }
 0x9d5   :  { %v1128_v34 = vpop.xlane.xlu1 %1127  ;;  %v1857_v35 = vpop.permute.xlu2 %1856 }
 0x9d6   :  { %v1930_v36 = vpop.eup %1929  ;;  %v1144_v17 = vsub.f32 %v1112_v7, %v1128_v34  ;;  %v1858_v38 = vunpack.i.l.bf16 %v1857_v35  ;;  %v1859_v40 = vunpack.i.h.bf16 %v1857_v35 }
 0x9d7   :  { %v1180_v29 = vsel %vm311_vm7, %v1930_v36, 0.0 }
 0x9d8   :  { %v1932_v28 = vpop.eup %1931  ;;  %v1155_v39 = vmul.f32 1.442695, %v1144_v17  ;;  %1181 = vadd.xlane.f32.xlu0 %v1180_v29  ;;  %1401 = vmatpush.msra.mxu2 %v1858_v38 }
 0x9d9   :  { %v1171_v41 = vsel %vm311_vm7, %v1932_v28, 0.0 }
 0x9da   :  { %1933 = vpow2.f32 %v1155_v39  ;;  %1172 = vadd.xlane.f32.xlu1 %v1171_v41  ;;  %1402 = vmatpush.msra.mxu2 %v1859_v40 }
 0x9db   :  { %1795 = vmatmul.msk.f32.vlgmr.msra.gmra.mxu2 %vm311_vm7, %v1928_v25 }
 0x9dd   :  { %v1137_v42 = vpop.xlane.xlu1 %1136 }
 0x9de   :  { %v1147_v43 = vsub.f32 %v1115_v10, %v1137_v42  ;;  %v1862_v44 = vpop.permute.xlu0 %1861 }
 0x9df   :  { %v1863_v45 = vunpack.i.l.bf16 %v1862_v44  ;;  %v1864_v48 = vunpack.i.h.bf16 %v1862_v44 }
 0x9e0   :  { %v1934_v46 = vpop.eup %1933  ;;  %v1161_v47 = vmul.f32 1.442695, %v1147_v43 }
 0x9e1   :  { %1438 = vmatpush.msra.mxu3 %v1863_v45  ;;  %v1174_v49 = vsel %vm311_vm7, %v1934_v46, 0.0 }
 0x9e2   :  { %1935 = vpow2.f32 %v1161_v47  ;;  %1175 = vadd.xlane.f32.xlu2 %v1174_v49 }
 0x9e3   :  { %1796 = vmatmul.msk.f32.gmra.mxu2 %vm311_vm7, %v1930_v36  ;;  %1439 = vmatpush.msra.mxu3 %v1864_v48 }
 0x9e5   :  { %v1140_v50 = vpop.xlane.xlu1 %1139 }
 0x9e6   :  { %v1148_v51 = vsub.f32 %v1116_v13, %v1140_v50 }
 0x9e8   :  { %v1936_v53 = vpop.eup %1935  ;;  %v1163_v54 = vmul.f32 1.442695, %v1148_v51 }
 0x9e9   :  { %1797 = vmatmul.msk.f32.vlgmr.msra.gmra.mxu3 %vm311_vm7, %v1936_v53  ;;  %v1183_v55 = vsel %vm311_vm7, %v1936_v53, 0.0 }
 0x9ea   :  { %1937 = vpow2.f32 %v1163_v54  ;;  %1184 = vadd.xlane.f32.xlu0 %v1183_v55 }
 0x9f0   :  { %v1938_v56 = vpop.eup %1937 }
 0x9f1   :  { %1798 = vmatmul.msk.f32.gmra.mxu3 %vm311_vm7, %v1938_v56  ;;  %v1186_v57 = vsel %vm311_vm7, %v1938_v56, 0.0 }
 0x9f2   :  { %1187 = vadd.xlane.f32.xlu2 %v1186_v57 }
 0x9f3   :  { %1876 = vrot.lane.b32.xlu1 %v1875_v4, %s2008_s0 }
 0x9fd   :  { %v1867_v59 = vpop.permute.xlu1 %1866 }
 0x9fe   :  { %v1868_v60 = vunpack.i.l.bf16 %v1867_v59  ;;  %v1869_v61 = vunpack.i.h.bf16 %v1867_v59 }
 0xa00   :  { %1364 = vmatpush.msra.mxu1 %v1868_v60 }
 0xa02   :  { %1365 = vmatpush.msra.mxu1 %v1869_v61 }
 0xa03   :  { %1793 = vmatmul.msk.f32.vlgmr.msra.gmra.mxu1 %vm311_vm7, %v1932_v28 }
 0xa05   :  { %v1872_v62 = vpop.permute.xlu1 %1871 }
 0xa06   :  { %v1873_v63 = vunpack.i.l.bf16 %v1872_v62  ;;  %v1874_v6 = vunpack.i.h.bf16 %v1872_v62 }
 0xa08   :  { %1327 = vmatpush.msra.mxu0 %v1873_v63 }
 0xa09   :  { %v1122_v7 = vpop.xlane.xlu0 %1121 }
 0xa0a   :  { %v1142_v8 = vsub.f32 %v2516_v16, %v1122_v7  ;;  %1328 = vmatpush.msra.mxu0 %v1874_v6 }
 0xa0b   :  { %1794 = vmatmul.msk.f32.gmra.mxu1 %vm311_vm7, %v1934_v46 }
 0xa0c   :  { %v1151_v9 = vmul.f32 1.442695, %v1142_v8 }
 0xa0e   :  { %1939 = vpow2.f32 %v1151_v9  ;;  %v1119_v0 = vpop.xlane.xlu2 %1118 }
 0xa0f   :  { %v1141_v1 = vsub.f32 %v2522_v19, %v1119_v0 }
 0xa11   :  { %v1149_v4 = vmul.f32 1.442695, %v1141_v1 }
 0xa13   :  { %1941 = vpow2.f32 %v1149_v4 }
 0xa14   :  { %v1940_v10 = vpop.eup %1939 }
 0xa15   :  { %v1168_v15 = vsel %vm311_vm7, %v1940_v10, 0.0 }
 0xa16   :  { %1169 = vadd.xlane.f32.xlu2 %v1168_v15 }
 0xa19   :  { %v1942_v11 = vpop.eup %1941 }
 0xa1a   :  { %1791 = vmatmul.msk.f32.vlgmr.msra.gmra.mxu0 %vm311_vm7, %v1942_v11  ;;  %v1165_v12 = vsel %vm311_vm7, %v1942_v11, 0.0 }
 0xa1b   :  { %1166 = vadd.xlane.f32.xlu0 %v1165_v12 }
 0xa22   :  { %1792 = vmatmul.msk.f32.gmra.mxu0 %vm311_vm7, %v1940_v10 }
 0xa2e   :  { %1881 = vrot.lane.b32.xlu2 %v1880_v5, %s2008_s0 }
 0xa39   :  { %v2552_v18 = vpop.xlane.xlu2 %1178 }
 0xa4b   :  { %v1182_v13 = vpop.xlane.xlu0 %1181 }
 0xa4c   :  { %1943 = vrcp.f32 %v1182_v13  ;;  %v1270_v58 = vand.u32 2147483648, %v1182_v13  ;;  %vm1264_vm2 = vweird.f32 %v1182_v13  ;;  %v1268_v2 = vand.u32 2147483647, %v1182_v13 }
 0xa4d   :  { %v2558_v22 = vpop.xlane.xlu1 %1172 }
 0xa4e   :  { %v1271_v23 = vor.u32 1.1754944e-38, %v1270_v58  ;;  %vm1269_vm6 = vcmp.eq.f32.partialorder %v1268_v2, 8.507059e+37  ;;  %v1228_v8 = vand.u32 2147483648, %v2558_v22  ;;  %v1226_v9 = vand.u32 2147483647, %v2558_v22 }
 0xa50   :  { %v1229_v10 = vor.u32 1.1754944e-38, %v1228_v8 }
 0xa52   :  { %v1944_v14 = vpop.eup %1943 }
 0xa53   :  { %v1260_v16 = vmul.f32 %v1944_v14, %v1182_v13  ;;  %vm1265_vm1 = vweird.f32 %v1944_v14 }
 0xa54   :  { %vm1266_vm5 = vmor %vm1264_vm2, %vm1265_vm1 }
 0xa55   :  { %v1261_v19 = vsub.f32 1.0, %v1260_v16  ;;  %v2554_v24 = vpop.xlane.xlu2 %1175  ;;  %v1256_v16 = vand.u32 2147483648, %v2552_v18 }
 0xa57   :  { %v1262_v20 = vmul.f32 %v1944_v14, %v1261_v19  ;;  %v1254_v19 = vand.u32 2147483647, %v2552_v18 }
 0xa59   :  { %v1263_v25 = vadd.f32 %v1944_v14, %v1262_v20 }
 0xa5b   :  { %v1267_v3 = vsel %vm1266_vm5, %v1944_v14, %v1263_v25  ;;  %vm1222_vm5 = vweird.f32 %v2558_v22  ;;  %v1257_v25 = vor.u32 1.1754944e-38, %v1256_v16 }
 0xa5c   :  { %v1272_v33 = vsel %vm1269_vm6, %v1271_v23, %v1267_v3  ;;  %v1242_v3 = vand.u32 2147483648, %v2554_v24 }
 0xa5d   :  { %v1185_v27 = vpop.xlane.xlu0 %1184 }
 0xa5e   :  { %1945 = vrcp.f32 %v1185_v27  ;;  %v2556_v21 = vpop.f32.mrf.mxu2  ;;  %v1284_v36 = vand.u32 2147483648, %v1185_v27  ;;  %v1282_v38 = vand.u32 2147483647, %v1185_v27  ;;  %vm1278_vm10 = vweird.f32 %v1185_v27 }
 0xa5f   :  { %1947 = vrcp.f32 %v2558_v22  ;;  %v1243_v23 = vor.u32 1.1754944e-38, %v1242_v3 }
 0xa60   :  { %v1285_v40 = vor.u32 1.1754944e-38, %v1284_v36  ;;  %vm1283_vm12 = vcmp.eq.f32.partialorder %v1282_v38, 8.507059e+37 }
 0xa64   :  { %v1946_v5 = vpop.eup %1945 }
 0xa65   :  { %v1274_v30 = vmul.f32 %v1946_v5, %v1185_v27  ;;  %v1188_v31 = vpop.xlane.xlu2 %1187  ;;  %vm1279_vm8 = vweird.f32 %v1946_v5  ;;  %v1948_v29 = vpop.eup %1947 }
 0xa66   :  { %1949 = vrcp.f32 %v1188_v31  ;;  %v1407_v52 = vpop.f32.mrf.mxu2  ;;  %vm1280_vm11 = vmor %vm1278_vm10, %vm1279_vm8  ;;  %v1218_v42 = vmul.f32 %v1948_v29, %v2558_v22  ;;  %v1298_v48 = vand.u32 2147483648, %v1188_v31  ;;  %v1296_v51 = vand.u32 2147483647, %v1188_v31 }
 0xa67   :  { %v1275_v34 = vsub.f32 1.0, %v1274_v30  ;;  %v1411_v35 = vmul.f32 %v1407_v52, %v1272_v33  ;;  %1951 = vrcp.f32 %v2552_v18  ;;  %vm1292_vm15 = vweird.f32 %v1188_v31  ;;  %v1877_v52 = vpop.permute.xlu1 %1876 }
 0xa68   :  { %v1219_v49 = vsub.f32 1.0, %v1218_v42  ;;  %1953 = vrcp.f32 %v2554_v24  ;;  %v1299_v55 = vor.u32 1.1754944e-38, %v1298_v48  ;;  %vm1297_vm1 = vcmp.eq.f32.partialorder %v1296_v51, 8.507059e+37 }
 0xa69   :  { %1461 = vrot.lane.b32.xlu2 %v1411_v35, %s2010_s19  ;;  %v1276_v17 = vmul.f32 %v1946_v5, %v1275_v34  ;;  %vm1223_vm2 = vweird.f32 %v1948_v29  ;;  %vm1227_vm8 = vcmp.eq.f32.partialorder %v1226_v9, 8.507059e+37  ;;  %v1879_v34 = vunpack.i.h.bf16 %v1877_v52 }
 0xa6a   :  { %v1220_v59 = vmul.f32 %v1948_v29, %v1219_v49  ;;  %vm1224_vm6 = vmor %vm1222_vm5, %vm1223_vm2  ;;  %v1878_v35 = vunpack.i.l.bf16 %v1877_v52  ;;  %v1754_v52 = vld [vmem:[%s2701_s3 + $0x78] sm:$0xff] }
 0xa6b   :  { %v1277_v28 = vadd.f32 %v1946_v5, %v1276_v17  ;;  %1604 = vmatpush.msrb.mxu1 %v1754_v52 }
 0xa6c   :  { %v1950_v39 = vpop.eup %1949  ;;  %v1441_v41 = vpop.f32.mrf.mxu3  ;;  %v1221_v6 = vadd.f32 %v1948_v29, %v1220_v59  ;;  %1514 = vmatpush.msrb.mxu0 %v1878_v35  ;;  %v1750_v35 = vld [vmem:[%s2701_s3 + $0x58] sm:$0xff] }
 0xa6d   :  { %v1288_v43 = vmul.f32 %v1950_v39, %v1188_v31  ;;  %v1281_v44 = vsel %vm1280_vm11, %v1946_v5, %v1277_v28  ;;  %vm1293_vm14 = vweird.f32 %v1950_v39  ;;  %v1952_v53 = vpop.eup %1951  ;;  %vm1250_vm11 = vweird.f32 %v2552_v18 }
 0xa6e   :  { %v1286_v45 = vsel %vm1283_vm12, %v1285_v40, %v1281_v44  ;;  %vm1294_vm0 = vmor %vm1292_vm15, %vm1293_vm14  ;;  %v1246_v56 = vmul.f32 %v1952_v53, %v2552_v18  ;;  %v1954_v7 = vpop.eup %1953  ;;  %v1225_v4 = vsel %vm1224_vm6, %v1948_v29, %v1221_v6  ;;  %vm1251_vm10 = vweird.f32 %v1952_v53  ;;  %1515 = vmatpush.msrb.mxu0 %v1879_v34  ;;  %v1752_v34 = vld [vmem:[%s2701_s3 + $0x68] sm:$0xff] }
 0xa6f   :  { %v1289_v46 = vsub.f32 1.0, %v1288_v43  ;;  %v1447_v47 = vmul.f32 %v1441_v41, %v1286_v45  ;;  %v1232_v0 = vmul.f32 %v1954_v7, %v2554_v24  ;;  %v1230_v15 = vsel %vm1227_vm8, %v1229_v10, %v1225_v4  ;;  %vm1252_vm12 = vmor %vm1250_vm11, %vm1251_vm10  ;;  %1605 = vmatpush.msrb.mxu1 %v1752_v34 }
 0xa70   :  { %v1247_v63 = vsub.f32 1.0, %v1246_v56  ;;  %vm1255_vm14 = vcmp.eq.f32.partialorder %v1254_v19, 8.507059e+37  ;;  %vm1237_vm15 = vweird.f32 %v1954_v7  ;;  %v1240_v5 = vand.u32 2147483647, %v2554_v24 }
 0xa71   :  { %1467 = vrot.lane.b32.xlu1 %v1447_v47, %s2009_s18  ;;  %v1290_v50 = vmul.f32 %v1950_v39, %v1289_v46  ;;  %v1233_v12 = vsub.f32 1.0, %v1232_v0  ;;  %1606 = vmatpush.msrb.mxu1 %v1750_v35 }
 0xa72   :  { %v1248_v1 = vmul.f32 %v1952_v53, %v1247_v63  ;;  %vm1241_vm2 = vcmp.eq.f32.partialorder %v1240_v5, 8.507059e+37 }
 0xa73   :  { %v1291_v54 = vadd.f32 %v1950_v39, %v1290_v50  ;;  %v1234_v27 = vmul.f32 %v1954_v7, %v1233_v12 }
 0xa74   :  { %v1444_v61 = vpop.f32.mrf.mxu3  ;;  %v1249_v13 = vadd.f32 %v1952_v53, %v1248_v1 }
 0xa75   :  { %v1295_v57 = vsel %vm1294_vm0, %v1950_v39, %v1291_v54  ;;  %v1235_v2 = vadd.f32 %v1954_v7, %v1234_v27  ;;  %vm1236_vm0 = vweird.f32 %v2554_v24 }
 0xa76   :  { %v1300_v60 = vsel %vm1297_vm1, %v1299_v55, %v1295_v57  ;;  %v1253_v20 = vsel %vm1252_vm12, %v1952_v53, %v1249_v13  ;;  %vm1238_vm1 = vmor %vm1236_vm0, %vm1237_vm15  ;;  %v2593_v13 = vld [vmem:[%s2703_s5 + $0x10] sm:$0xff] }
 0xa77   :  { %v1448_v62 = vmul.f32 %v1444_v61, %v1300_v60  ;;  %v1258_v58 = vsel %vm1255_vm14, %v1257_v25, %v1253_v20  ;;  %v1239_v18 = vsel %vm1238_vm1, %v1954_v7, %v1235_v2 }
 0xa78   :  { %v1410_v22 = vmul.f32 %v2556_v21, %v1258_v58  ;;  %v1244_v31 = vsel %vm1241_vm2, %v1243_v23, %v1239_v18 }
 0xa79   :  { %1469 = vrot.lane.b32.xlu1 %v1448_v62, %s2009_s18 }
 0xa80   :  { %v1367_v11 = vpop.f32.mrf.mxu1 }
 0xa81   :  { %v1373_v14 = vmul.f32 %v1367_v11, %v1230_v15 }
 0xa83   :  { %1451 = vrot.lane.b32.xlu0 %v1373_v14, %s2003_s12  ;;  %v1479_v14 = vperm.slane %v2593_v13, 0 }
 0xa88   :  { %v1370_v30 = vpop.f32.mrf.mxu1 }
 0xa89   :  { %v1374_v33 = vmul.f32 %v1370_v30, %v1244_v31  ;;  %v1170_v21 = vpop.xlane.xlu2 %1169 }
 0xa8a   :  { %v1214_v56 = vand.u32 2147483648, %v1170_v21  ;;  %vm1208_vm12 = vweird.f32 %v1170_v21  ;;  %v1212_v61 = vand.u32 2147483647, %v1170_v21 }
 0xa8b   :  { %1459 = vrot.lane.b32.xlu0 %v1410_v22, %s2010_s19 }
 0xa8c   :  { %v1215_v7 = vor.u32 1.1754944e-38, %v1214_v56  ;;  %vm1213_vm15 = vcmp.eq.f32.partialorder %v1212_v61, 8.507059e+37 }
 0xa8e   :  { %v1167_v24 = vpop.xlane.xlu0 %1166 }
 0xa8f   :  { %1955 = vrcp.f32 %v1167_v24  ;;  %v1200_v44 = vand.u32 2147483648, %v1167_v24  ;;  %vm1194_vm6 = vweird.f32 %v1167_v24  ;;  %v1198_v45 = vand.u32 2147483647, %v1167_v24 }
 0xa90   :  { %1957 = vrcp.f32 %v1170_v21 }
 0xa91   :  { %v1882_v36 = vpop.permute.xlu2 %1881  ;;  %v1201_v49 = vor.u32 1.1754944e-38, %v1200_v44  ;;  %vm1199_vm10 = vcmp.eq.f32.partialorder %v1198_v45, 8.507059e+37  ;;  %v1767_v44 = vld [vmem:[%s2702_s4 + $0xe0] sm:$0xff] }
 0xa92   :  { %v1883_v17 = vunpack.i.l.bf16 %v1882_v36  ;;  %v1884_v38 = vunpack.i.h.bf16 %v1882_v36  ;;  %v1748_v36 = vld [vmem:[%s2701_s3 + $0x48] sm:$0xff] }
 0xa93   :  { %1453 = vrot.lane.b32.xlu0 %v1374_v33, %s2003_s12  ;;  %1607 = vmatpush.msrb.mxu1 %v1748_v36 }
 0xa94   :  { %1516 = vmatpush.msrb.mxu0 %v1883_v17 }
 0xa95   :  { %v1956_v29 = vpop.eup %1955 }
 0xa96   :  { %1517 = vmatpush.msrb.mxu0 %v1884_v38  ;;  %v1190_v28 = vmul.f32 %v1956_v29, %v1167_v24  ;;  %v1958_v40 = vpop.eup %1957  ;;  %vm1195_vm5 = vweird.f32 %v1956_v29 }
 0xa97   :  { %v1204_v42 = vmul.f32 %v1958_v40, %v1170_v21  ;;  %vm1196_vm8 = vmor %vm1194_vm6, %vm1195_vm5  ;;  %v1330_v50 = vpop.f32.mrf.mxu0  ;;  %vm1209_vm11 = vweird.f32 %v1958_v40 }
 0xa98   :  { %v1191_v39 = vsub.f32 1.0, %v1190_v28  ;;  %vm1210_vm14 = vmor %vm1208_vm12, %vm1209_vm11 }
 0xa99   :  { %v1205_v46 = vsub.f32 1.0, %v1204_v42 }
 0xa9a   :  { %v1192_v41 = vmul.f32 %v1956_v29, %v1191_v39  ;;  %v1770_v39 = vld [vmem:[%s2702_s4 + $0xf8] sm:$0xff] }
 0xa9b   :  { %v1206_v53 = vmul.f32 %v1958_v40, %v1205_v46  ;;  %1618 = vmatpush.msrb.mxu2 %v1770_v39 }
 0xa9c   :  { %v1193_v43 = vadd.f32 %v1956_v29, %v1192_v41  ;;  %v1768_v41 = vld [vmem:[%s2702_s4 + $0xe8] sm:$0xff] }
 0xa9d   :  { %v1207_v55 = vadd.f32 %v1958_v40, %v1206_v53  ;;  %v1764_v53 = vld [vmem:[%s2702_s4 + $0xc8] sm:$0xff] }
 0xa9e   :  { %v1197_v47 = vsel %vm1196_vm8, %v1956_v29, %v1193_v43  ;;  %v1772_v29 = vld [vmem:[%s2703_s5 + $0x18] sm:$0xff] }
 0xa9f   :  { %v1202_v51 = vsel %vm1199_vm10, %v1201_v49, %v1197_v47  ;;  %v1211_v6 = vsel %vm1210_vm14, %v1958_v40, %v1207_v55  ;;  %v1333_v8 = vpop.f32.mrf.mxu0  ;;  %v1577_v28 = vperm.slane %v1772_v29, 0  ;;  %v1769_v40 = vld [vmem:[%s2702_s4 + $0xf0] sm:$0xff]  ;;  %v1763_v55 = vld [vmem:[%s2702_s4 + $0xc0] sm:$0xff] }
 0xaa0   :  { %v1336_v54 = vmul.f32 %v1330_v50, %v1202_v51  ;;  %v1216_v9 = vsel %vm1213_vm15, %v1215_v7, %v1211_v6  ;;  %1619 = vmatpush.msrb.mxu2 %v1769_v40  ;;  %v1765_v50 = vld [vmem:[%s2702_s4 + $0xd0] sm:$0xff] }
 0xaa1   :  { %v1337_v0 = vmul.f32 %v1333_v8, %v1216_v9  ;;  %v1574_v8 = vperm.slane %v2593_v13, 2  ;;  %v1760_v9 = vld [vmem:[%s2702_s4 + $0xa8] sm:$0xff] }
 0xaa2   :  { %1620 = vmatpush.msrb.mxu2 %v1768_v41 }
 0xaa4   :  { %1621 = vmatpush.msrb.mxu2 %v1767_v44 }
 0xac3   :  { %v1462_v4 = vpop.permute.xlu2 %1461 }
 0xae3   :  { %v1468_v57 = vpop.permute.xlu1 %1467 }
 0xaeb   :  { %v1470_v15 = vpop.permute.xlu1 %1469 }
 0xaf5   :  { %v1452_v48 = vpop.permute.xlu0 %1451 }
 0xaf6   :  { %v1473_v59 = vsel %vm84_vm4, %v1336_v54, %v1452_v48  ;;  %v1766_v48 = vld [vmem:[%s2702_s4 + $0xd8] sm:$0xff] }
 0xaf7   :  { %1622 = vmatpush.msrb.mxu2 %v1766_v48 }
 0xaf9   :  { %1623 = vmatpush.msrb.mxu2 %v1765_v50 }
 0xafb   :  { %1624 = vmatpush.msrb.mxu2 %v1764_v53 }
 0xafd   :  { %v1460_v60 = vpop.permute.xlu0 %1459  ;;  %1625 = vmatpush.msrb.mxu2 %v1763_v55 }
 0xafe   :  { %v1475_v62 = vsel %vm311_vm7, %v1473_v59, %v1460_v60  ;;  %v1762_v59 = vld [vmem:[%s2702_s4 + $0xb8] sm:$0xff]  ;;  %v1571_v60 = vperm.slane %v2593_v13, 1 }
 0xaff   :  { %v1477_v63 = vsel %vm672_vm13, %v1475_v62, %v1468_v57  ;;  %1626 = vmatpush.msrb.mxu2 %v1762_v59 }
 0xb00   :  { %1799 = vmatmul.msk.f32.vlgmr.msrb.gmra.mxu0 %vm119_vm3, %v1477_v63  ;;  %v1761_v63 = vld [vmem:[%s2702_s4 + $0xb0] sm:$0xff] }
 0xb01   :  { %1627 = vmatpush.msrb.mxu2 %v1761_v63 }
 0xb03   :  { %1628 = vmatpush.msrb.mxu2 %v1760_v9 }
 0xb05   :  { %v1454_v1 = vpop.permute.xlu0 %1453 }
 0xb06   :  { %v1474_v10 = vsel %vm84_vm4, %v1337_v0, %v1454_v1 }
 0xb07   :  { %v1476_v11 = vsel %vm311_vm7, %v1474_v10, %v1462_v4  ;;  %v1759_v4 = vld [vmem:[%s2702_s4 + $0xa0] sm:$0xff] }
 0xb08   :  { %v1478_v12 = vsel %vm672_vm13, %v1476_v11, %v1470_v15  ;;  %v1758_v11 = vld [vmem:[%s2702_s4 + $0x98] sm:$0xff]  ;;  %1629 = vmatpush.msrb.mxu2 %v1759_v4 }
 0xb09   :  { %1800 = vmatmul.msk.f32.gmra.mxu0 %vm119_vm3, %v1478_v12 }
 0xb0a   :  { %1630 = vmatpush.msrb.mxu2 %v1758_v11 }
 0xb7d   :  { %v1519_v16 = vpop.f32.mrf.mxu0 }
 0xb7e   :  { %v1520_v19 = vadd.f32 %v1519_v16, %v1479_v14 }
 0xb80   :  { %v1525_v20 = vadd.f32 %v1520_v19, %v2440_v32 }
 0xb82   :  { %v1527_v27 = vsel %vm119_vm3, %v1525_v20, 0.0 }
 0xb83   :  { %1528 = vadd.xlane.f32.xlu0 %v1527_v27  ;;  %v1757_v27 = vld [vmem:[%s2702_s4 + $0x90] sm:$0xff] }
 0xb84   :  { %1631 = vmatpush.msrb.mxu2 %v1757_v27 }
 0xb86   :  { %v1522_v25 = vpop.f32.mrf.mxu0 }
 0xb87   :  { %v1523_v58 = vadd.f32 %v1522_v25, %v1479_v14  ;;  %v1756_v25 = vld [vmem:[%s2702_s4 + $0x88] sm:$0xff] }
 0xb88   :  { %1632 = vmatpush.msrb.mxu2 %v1756_v25 }
 0xb89   :  { %v1526_v22 = vadd.f32 %v1523_v58, %v2444_v37  ;;  %v1755_v58 = vld [vmem:[%s2702_s4 + $0x80] sm:$0xff]  ;;  %s2012_s4 = smov [#allocation2]  }
 0xb8a   :  { %1633 = vmatpush.msrb.mxu2 %v1755_v58  ;;  %s1699_s3 = sshll.u32 %s2012_s4, 4  ;;  %s1700_s3 = int_to_ptr.vmem [resolvable:$true] %s1699_s3 }
 0xb8b   :  { %v1530_v2 = vsel %vm119_vm3, %v1526_v22, 0.0 }
 0xb8c   :  { %1531 = vadd.xlane.f32.xlu2 %v1530_v2 }
 0xba4   :  { %1580 = vrot.lane.b32.xlu2 %v1479_v14, %s1998_s2 }
 0xbf6   :  { %v1529_v3 = vpop.xlane.xlu0 %1528 }
 0xbf7   :  { %v1533_v5 = vmul.f32 %v1529_v3, %v2319_v26 }
 0xbf9   :  { %v1535_v18 = vsub.f32 %v1525_v20, %v1533_v5 }
 0xbfb   :  { %v1537_v23 = vmul.f32 %v1535_v18, %v1535_v18 }
 0xbfd   :  { %v1539_v30 = vsel %vm119_vm3, %v1537_v23, 0.0 }
 0xbfe   :  { %1540 = vadd.xlane.f32.xlu1 %v1539_v30 }
 0xbff   :  { %v1532_v32 = vpop.xlane.xlu2 %1531 }
 0xc00   :  { %v1534_v31 = vmul.f32 %v1532_v32, %v2319_v26 }
 0xc02   :  { %v2604_v33 = vsub.f32 %v1526_v22, %v1534_v31 }
 0xc04   :  { %v1538_v37 = vmul.f32 %v2604_v33, %v2604_v33 }
 0xc06   :  { %v1542_v21 = vsel %vm119_vm3, %v1538_v37, 0.0 }
 0xc07   :  { %1543 = vadd.xlane.f32.xlu0 %v1542_v21  ;;  %v1581_v2 = vpop.permute.xlu2 %1580 }
 0xc17   :  { %1582 = vrot.lane.b32.xlu1 %v1577_v28, %s1998_s2 }
 0xc71   :  { %v1541_v17 = vpop.xlane.xlu1 %1540 }
 0xc72   :  { %v1545_v38 = vmul.f32 %v1541_v17, %v2319_v26 }
 0xc74   :  { %v1547_v24 = vadd.f32 1e-05, %v1545_v38 }
 0xc76   :  { %1959 = vrsqrt.f32 %v1547_v24  ;;  %vm1555_vm7 = vweird.f32 %v1547_v24 }
 0xc7a   :  { %v1544_v42 = vpop.xlane.xlu0 %1543 }
 0xc7b   :  { %v1546_v43 = vmul.f32 %v1544_v42, %v2319_v26 }
 0xc7c   :  { %v1960_v45 = vpop.eup %1959 }
 0xc7d   :  { %v1550_v46 = vmul.f32 %v1960_v45, %v1547_v24  ;;  %v1548_v47 = vadd.f32 1e-05, %v1546_v43  ;;  %vm1556_vm4 = vweird.f32 %v1960_v45 }
 0xc7e   :  { %vm1557_vm13 = vmor %vm1555_vm7, %vm1556_vm4 }
 0xc7f   :  { %v1551_v49 = vmul.f32 %v1960_v45, %v1550_v46  ;;  %1961 = vrsqrt.f32 %v1548_v47  ;;  %vm1565_vm1 = vweird.f32 %v1548_v47 }
 0xc81   :  { %v1552_v51 = vmul.f32 0.5, %v1551_v49 }
 0xc83   :  { %v1553_v54 = vsub.f32 1.5, %v1552_v51 }
 0xc85   :  { %v1962_v56 = vpop.eup %1961  ;;  %v1554_v57 = vmul.f32 %v1960_v45, %v1553_v54 }
 0xc86   :  { %v1560_v61 = vmul.f32 %v1962_v56, %v1548_v47  ;;  %vm1566_vm0 = vweird.f32 %v1962_v56 }
 0xc87   :  { %v1558_v62 = vsel %vm1557_vm13, %v1960_v45, %v1554_v57  ;;  %vm1567_vm2 = vmor %vm1565_vm1, %vm1566_vm0 }
 0xc88   :  { %v1569_v6 = vmul.f32 %v1558_v62, %v1535_v18  ;;  %v1561_v7 = vmul.f32 %v1962_v56, %v1560_v61  ;;  %v1687_v61 = vperm.slane %v2593_v13, 4 }
 0xc89   :  { %v1583_v22 = vpop.permute.xlu1 %1582 }
 0xc8a   :  { %v1572_v0 = vmul.f32 %v1571_v60, %v1569_v6  ;;  %v1562_v1 = vmul.f32 0.5, %v1561_v7  ;;  %v1584_v3 = vsel %vm787_vm9, %v1581_v2, %v1583_v22 }
 0xc8c   :  { %v1563_v10 = vsub.f32 1.5, %v1562_v1  ;;  %v1575_v15 = vadd.f32 %v1574_v8, %v1572_v0 }
 0xc8e   :  { %v1564_v12 = vmul.f32 %v1962_v56, %v1563_v10  ;;  %1801 = vmatmul.msk.f32.vlgmr.msrb.gmra.mxu1 %vm119_vm3, %v1575_v15 }
 0xc90   :  { %v1568_v14 = vsel %vm1567_vm2, %v1962_v56, %v1564_v12 }
 0xc91   :  { %v1570_v16 = vmul.f32 %v1568_v14, %v2604_v33  ;;  %v1617_v33 = vperm.slane %v2593_v13, 3 }
 0xc93   :  { %v1573_v19 = vmul.f32 %v1571_v60, %v1570_v16 }
 0xc95   :  { %v1576_v20 = vadd.f32 %v1574_v8, %v1573_v19 }
 0xc97   :  { %1802 = vmatmul.msk.f32.gmra.mxu1 %vm119_vm3, %v1576_v20 }
 0xd0b   :  { %v1609_v5 = vpop.f32.mrf.mxu1 }
 0xd0c   :  { %v1610_v18 = vadd.f32 %v1609_v5, %v1584_v3 }
 0xd0e   :  { %v1615_v23 = vmax.f32 %v1610_v18, 0.0 }
 0xd10   :  { %1634 = vmatmul.f32.vlgmr.msrb.gmra.mxu2 %v1615_v23 }
 0xd14   :  { %v1612_v30 = vpop.f32.mrf.mxu1 }
 0xd15   :  { %v1613_v32 = vadd.f32 %v1612_v30, %v1584_v3 }
 0xd17   :  { %v1616_v31 = vmax.f32 %v1613_v32, 0.0 }
 0xd19   :  { %1637 = vmatmul.f32.gmra.mxu2 %v1616_v31 }
 0xd93   :  { %v1635_v37 = vpop.f32.mrf.mxu2 }
 0xd94   :  { %v1636_v21 = vadd.f32 %v1635_v37, %v1617_v33 }
 0xd96   :  { %v1641_v52 = vadd.f32 %v1636_v21, %v1575_v15 }
 0xd98   :  { %v1643_v34 = vsel %vm119_vm3, %v1641_v52, 0.0 }
 0xd99   :  { %1644 = vadd.xlane.f32.xlu0 %v1643_v34 }
 0xd9c   :  { %v1638_v35 = vpop.f32.mrf.mxu2 }
 0xd9d   :  { %v1639_v36 = vadd.f32 %v1638_v35, %v1617_v33 }
 0xd9f   :  { %v1642_v17 = vadd.f32 %v1639_v36, %v1576_v20 }
 0xda1   :  { %v1646_v38 = vsel %vm119_vm3, %v1642_v17, 0.0 }
 0xda2   :  { %1647 = vadd.xlane.f32.xlu0 %v1646_v38 }
 0xe0c   :  { %v1645_v24 = vpop.xlane.xlu0 %1644 }
 0xe0d   :  { %v1649_v29 = vmul.f32 %v1645_v24, %v2319_v26 }
 0xe0f   :  { %v1651_v28 = vsub.f32 %v1641_v52, %v1649_v29 }
 0xe11   :  { %v1653_v39 = vmul.f32 %v1651_v28, %v1651_v28 }
 0xe13   :  { %v1655_v40 = vsel %vm119_vm3, %v1653_v39, 0.0 }
 0xe14   :  { %1656 = vadd.xlane.f32.xlu0 %v1655_v40 }
 0xe15   :  { %v1648_v41 = vpop.xlane.xlu0 %1647 }
 0xe16   :  { %v1650_v42 = vmul.f32 %v1648_v41, %v2319_v26 }
 0xe18   :  { %v1652_v43 = vsub.f32 %v1642_v17, %v1650_v42 }
 0xe1a   :  { %v1654_v44 = vmul.f32 %v1652_v43, %v1652_v43 }
 0xe1c   :  { %v1658_v45 = vsel %vm119_vm3, %v1654_v44, 0.0 }
 0xe1d   :  { %1659 = vadd.xlane.f32.xlu2 %v1658_v45 }
 0xe87   :  { %v1657_v46 = vpop.xlane.xlu0 %1656 }
 0xe88   :  { %v1661_v47 = vmul.f32 %v1657_v46, %v2319_v26 }
 0xe8a   :  { %v1663_v48 = vadd.f32 1e-05, %v1661_v47 }
 0xe8c   :  { %1963 = vrsqrt.f32 %v1663_v48  ;;  %vm1671_vm5 = vweird.f32 %v1663_v48 }
 0xe90   :  { %v1660_v49 = vpop.xlane.xlu2 %1659 }
 0xe91   :  { %v1662_v50 = vmul.f32 %v1660_v49, %v2319_v26  ;;  %v1690_v26 = vperm.slane %v2593_v13, 5 }
 0xe92   :  { %v1964_v51 = vpop.eup %1963 }
 0xe93   :  { %v1666_v53 = vmul.f32 %v1964_v51, %v1663_v48  ;;  %v1664_v54 = vadd.f32 1e-05, %v1662_v50  ;;  %vm1672_vm9 = vweird.f32 %v1964_v51 }
 0xe94   :  { %vm1673_vm6 = vmor %vm1671_vm5, %vm1672_vm9 }
 0xe95   :  { %v1667_v55 = vmul.f32 %v1964_v51, %v1666_v53  ;;  %1965 = vrsqrt.f32 %v1664_v54  ;;  %vm1681_vm10 = vweird.f32 %v1664_v54 }
 0xe97   :  { %v1668_v56 = vmul.f32 0.5, %v1667_v55 }
 0xe99   :  { %v1669_v57 = vsub.f32 1.5, %v1668_v56 }
 0xe9b   :  { %v1966_v59 = vpop.eup %1965  ;;  %v1670_v60 = vmul.f32 %v1964_v51, %v1669_v57 }
 0xe9c   :  { %v1676_v62 = vmul.f32 %v1966_v59, %v1664_v54  ;;  %vm1682_vm8 = vweird.f32 %v1966_v59 }
 0xe9d   :  { %v1674_v63 = vsel %vm1673_vm6, %v1964_v51, %v1670_v60  ;;  %vm1683_vm11 = vmor %vm1681_vm10, %vm1682_vm8 }
 0xe9e   :  { %v1685_v6 = vmul.f32 %v1674_v63, %v1651_v28  ;;  %v1677_v7 = vmul.f32 %v1966_v59, %v1676_v62 }
 0xea0   :  { %v1688_v8 = vmul.f32 %v1687_v61, %v1685_v6  ;;  %v1678_v9 = vmul.f32 0.5, %v1677_v7 }
 0xea2   :  { %v1679_v0 = vsub.f32 1.5, %v1678_v9  ;;  %v1691_v1 = vadd.f32 %v1690_v26, %v1688_v8 }
 0xea4   :  { %v1680_v4 = vmul.f32 %v1966_v59, %v1679_v0  ;;  %1693 = vst.msk [vmem:[#allocation2] sm:$0xff] %vm119_vm3, %v1691_v1 }
 0xea6   :  { %v1684_v10 = vsel %vm1683_vm11, %v1966_v59, %v1680_v4 }
 0xea7   :  { %v1686_v15 = vmul.f32 %v1684_v10, %v1652_v43 }
 0xea9   :  { %v1689_v11 = vmul.f32 %v1687_v61, %v1686_v15 }
 0xeab   :  { %v1692_v13 = vadd.f32 %v1690_v26, %v1689_v11 }
 0xead   :  { %1694 = vst.msk [vmem:[#allocation2 + $0x8] sm:$0xff] %vm119_vm3, %v1692_v13 }
 0xeae   :  { %1707 = dma.vmem_to_hbm [thread:$0]  %s1700_s3, 256, %s1702_s10, [#allocation3], %s2013_s11, %s2013_s11, %s2003_s12  }
 0xeaf   :  { %1991 = dma.done.wait [#allocation3], 256  }
 0xeb0   :  { %1992 = vsyncadd [#allocation3], 4294967040 }
 0xeb1   :  { %1712 = vsyncpa [#allocation3], 1 }

</bundles_post_ra>
